<compile_context>
chip_gen: v5e
topology: v5e:2x2
jax: 0.10.0
libtpu: 0.0.40
codegen_flags: <defaults>
</compile_context>

<pallas_src>
import jax
import jax.numpy as jnp
from jax.experimental import pallas as pl
from jax.experimental.pallas import tpu as pltpu

HIDDEN = 50            # fc1 out / fc2 in width
LANES = 128            # vreg lane width
ROW_Q = 16             # row quantum: multiple of bf16 (16,128) and f32 (8,128) tiling
SUB_ROWS = 128         # rows per in-kernel sub-chunk (bounded live vreg set)
MAX_TILE_ROWS = 2048   # rows per grid step: 2048*128*4B = 1 MiB per f32 buffer


def _round_up(a, b):
    return ((a + b - 1) // b) * b


def _default_compute_dtype():
    # bf16 VALU packing exists only on v6e / v7x; v5e and older stay f32.
    try:
        kind = jax.devices()[0].device_kind.lower()
    except Exception:
        return jnp.float32
    if ("v6" in kind) or ("v7" in kind):
        return jnp.bfloat16
    return jnp.float32


def _make_kernel(tile_rows, sub_rows, hidden, compute_dtype, out_dtype):
    n_sub = tile_rows // sub_rows

    def kernel(w1_ref, b1_ref, w2_ref, b2_ref, x_ref, o_ref):
        b2 = b2_ref[0]                               # f32 scalar; folded into acc init
        for s in range(n_sub):                       # static sub-chunk loop
            r0 = s * sub_rows
            x = x_ref[pl.ds(r0, sub_rows), :]        # (sub_rows, 128) lane-dense batch
            acc = jnp.full(x.shape, b2, dtype=jnp.float32)
            for j in range(hidden):                  # unrolled over hidden units
                w1j = w1_ref[j].astype(compute_dtype)
                b1j = b1_ref[j].astype(compute_dtype)
                w2j = w2_ref[j].astype(compute_dtype)
                h = jnp.maximum(x * w1j + b1j, 0.0)  # bf16 chain on v6e/v7x, f32 on v5e
                acc = acc + (h * w2j).astype(jnp.float32)   # f32 accumulate
            o_ref[pl.ds(r0, sub_rows), :] = acc.astype(out_dtype)

    return kernel


def _choose_tiling(rows_q):
    if rows_q <= ROW_Q:                          # N <= 2048: single tiny tile
        tile_rows = rows_q
    elif rows_q <= 2 * SUB_ROWS:                 # <= 256 rows: two tiles (v7x: both TCs)
        tile_rows = _round_up(-(-rows_q // 2), ROW_Q)
    elif rows_q <= 2 * MAX_TILE_ROWS:            # medium: two large tiles
        tile_rows = _round_up(-(-rows_q // 2), SUB_ROWS)
    else:                                        # large N: stream MAX_TILE_ROWS tiles
        tile_rows = MAX_TILE_ROWS
    sub_rows = min(tile_rows, SUB_ROWS)          # tile_rows is always a multiple of it
    return tile_rows, sub_rows


def quadratic_model_forward(x, w1, b1, w2, b2, compute_dtype=None):
    """x: (N, 1) f32; w1, b1, w2: (50,) f32; b2: (1,) f32. Returns (N, 1) f32."""
    if compute_dtype is None:
        compute_dtype = _default_compute_dtype()
    n = x.shape[0]
    out_dtype = x.dtype

    rows = max(-(-n // LANES), 1)
    rows_q = _round_up(rows, ROW_Q)
    tile_rows, sub_rows = _choose_tiling(rows_q)
    grid_n = -(-rows_q // tile_rows)
    rows_p = grid_n * tile_rows
    n_pad = rows_p * LANES

    xf = x.reshape(-1)
    if xf.dtype != compute_dtype:
        xf = xf.astype(compute_dtype)
    if n_pad != n:  # pad only the small tail; aligned fast path is a pure reshape
        xf = jnp.concatenate([xf, jnp.zeros((n_pad - n,), compute_dtype)])
    x2d = xf.reshape(rows_p, LANES)

    kernel = _make_kernel(tile_rows, sub_rows, HIDDEN, compute_dtype, out_dtype)

    def smem_spec():
        return pl.BlockSpec(memory_space=pltpu.MemorySpace.SMEM)

    out2d = pl.pallas_call(
        kernel,
        out_shape=jax.ShapeDtypeStruct((rows_p, LANES), out_dtype),
        grid_spec=pltpu.PrefetchScalarGridSpec(
            num_scalar_prefetch=0,
            grid=(grid_n,),
            in_specs=[
                smem_spec(),   # w1 (50,)
                smem_spec(),   # b1 (50,)
                smem_spec(),   # w2 (50,)
                smem_spec(),   # b2 (1,)
                pl.BlockSpec((tile_rows, LANES), lambda i: (i, 0)),  # x tiles
            ],
            out_specs=pl.BlockSpec((tile_rows, LANES), lambda i: (i, 0)),
        ),
        compiler_params=pltpu.CompilerParams(
            dimension_semantics=("parallel",),
        ),
    )(w1, b1, w2, b2, x2d)

    out = out2d.reshape(-1)
    if n_pad != n:
        out = out[:n]
    return out.reshape(n, 1)


def init_params(key):
    # Mimics nn.Linear's uniform(-1/sqrt(fan_in), 1/sqrt(fan_in)) init; weights kept
    # flat (50,) since in/out features are 1.
    k1, k2, k3, k4 = jax.random.split(key, 4)
    bound1 = 1.0                      # fan_in = 1
    w1 = jax.random.uniform(k1, (HIDDEN,), jnp.float32, -bound1, bound1)
    b1 = jax.random.uniform(k2, (HIDDEN,), jnp.float32, -bound1, bound1)
    bound2 = 1.0 / (HIDDEN ** 0.5)    # fan_in = 50
    w2 = jax.random.uniform(k3, (HIDDEN,), jnp.float32, -bound2, bound2)
    b2 = jax.random.uniform(k4, (1,), jnp.float32, -bound2, bound2)
    return w1, b1, w2, b2


def _reference(x, w1, b1, w2, b2):
    h = jnp.maximum(x * w1[None, :] + b1[None, :], 0.0)   # (N, 50)
    return h @ w2.reshape(HIDDEN, 1) + b2.reshape(1, 1)   # (N, 1)


if __name__ == "__main__":
    key = jax.random.PRNGKey(0)
    key_x, key_p = jax.random.split(key)
    w1, b1, w2, b2 = init_params(key_p)

    auto_dtype = _default_compute_dtype()
    ok = True
    # 8/200 exercise the lane-padding tail path; 5000 exercises the 2-step parallel grid.
    for n in (8, 200, 5000):
        x = jax.random.normal(jax.random.fold_in(key_x, n), (n, 1), jnp.float32)
        ref = _reference(x, w1, b1, w2, b2)

        # Exact path: f32 compute chain, tight tolerance.
        out32 = jax.block_until_ready(
            quadratic_model_forward(x, w1, b1, w2, b2, compute_dtype=jnp.float32))
        assert out32.shape == (n, 1)
        ok = ok and bool(jnp.allclose(out32, ref, atol=1e-4, rtol=1e-5))

        # Auto path: bf16 compute chain + f32 accumulate on v6e/v7x, f32 elsewhere.
        out_auto = jax.block_until_ready(quadratic_model_forward(x, w1, b1, w2, b2))
        assert out_auto.shape == (n, 1)
        if auto_dtype == jnp.bfloat16:
            ok = ok and bool(jnp.allclose(out_auto, ref, atol=2e-1, rtol=2e-2))
        else:
            ok = ok and bool(jnp.allclose(out_auto, ref, atol=1e-4, rtol=1e-5))

    assert ok, "mismatch vs reference"
    print("KERNEL_OK")
</pallas_src>

<mosaic_0001>
module attributes {stable_mosaic.version = 11 : i64} {
  func.func @kernel(%arg0: i32, %arg1: memref<50xf32, #tpu.memory_space<smem>>, %arg2: memref<50xf32, #tpu.memory_space<smem>>, %arg3: memref<50xf32, #tpu.memory_space<smem>>, %arg4: memref<1xf32, #tpu.memory_space<smem>>, %arg5: memref<16x128xf32, #tpu.memory_space<vmem>>, %arg6: memref<16x128xf32, #tpu.memory_space<vmem>>) attributes {dimension_semantics = [#tpu.dimension_semantics<parallel>], iteration_bounds = array<i64: 1>, scalar_prefetch = 0 : i64, scratch_operands = 0 : i64, tpu.core_type = #tpu.core_type<tc>, window_params = [{transform_indices = @transform_0, window_bounds = array<i64: 50>}, {transform_indices = @transform_1, window_bounds = array<i64: 50>}, {transform_indices = @transform_2, window_bounds = array<i64: 50>}, {transform_indices = @transform_3, window_bounds = array<i64: 1>}, {transform_indices = @transform_4, window_bounds = array<i64: 16, 128>}, {transform_indices = @transform_5, window_bounds = array<i64: 16, 128>}]} {
    %c0 = arith.constant 0 : index
    %0 = memref.load %arg4[%c0] : memref<1xf32, #tpu.memory_space<smem>>
    %c0_0 = arith.constant 0 : index
    %c0_1 = arith.constant 0 : index
    %1 = vector.load %arg5[%c0_0, %c0_1] : memref<16x128xf32, #tpu.memory_space<vmem>>, vector<16x128xf32>
    %2 = vector.broadcast %0 : f32 to vector<16x128xf32>
    %c0_2 = arith.constant 0 : index
    %3 = memref.load %arg1[%c0_2] : memref<50xf32, #tpu.memory_space<smem>>
    %c0_3 = arith.constant 0 : index
    %4 = memref.load %arg2[%c0_3] : memref<50xf32, #tpu.memory_space<smem>>
    %c0_4 = arith.constant 0 : index
    %5 = memref.load %arg3[%c0_4] : memref<50xf32, #tpu.memory_space<smem>>
    %6 = vector.broadcast %3 : f32 to vector<16x128xf32>
    %7 = arith.mulf %1, %6 : vector<16x128xf32>
    %8 = vector.broadcast %4 : f32 to vector<16x128xf32>
    %9 = arith.addf %7, %8 : vector<16x128xf32>
    %cst = arith.constant 0.000000e+00 : f32
    %10 = vector.broadcast %cst : f32 to vector<16x128xf32>
    %11 = arith.maximumf %9, %10 : vector<16x128xf32>
    %12 = vector.broadcast %5 : f32 to vector<16x128xf32>
    %13 = arith.mulf %11, %12 : vector<16x128xf32>
    %14 = arith.addf %2, %13 : vector<16x128xf32>
    %c1 = arith.constant 1 : index
    %15 = memref.load %arg1[%c1] : memref<50xf32, #tpu.memory_space<smem>>
    %c1_5 = arith.constant 1 : index
    %16 = memref.load %arg2[%c1_5] : memref<50xf32, #tpu.memory_space<smem>>
    %c1_6 = arith.constant 1 : index
    %17 = memref.load %arg3[%c1_6] : memref<50xf32, #tpu.memory_space<smem>>
    %18 = vector.broadcast %15 : f32 to vector<16x128xf32>
    %19 = arith.mulf %1, %18 : vector<16x128xf32>
    %20 = vector.broadcast %16 : f32 to vector<16x128xf32>
    %21 = arith.addf %19, %20 : vector<16x128xf32>
    %cst_7 = arith.constant 0.000000e+00 : f32
    %22 = vector.broadcast %cst_7 : f32 to vector<16x128xf32>
    %23 = arith.maximumf %21, %22 : vector<16x128xf32>
    %24 = vector.broadcast %17 : f32 to vector<16x128xf32>
    %25 = arith.mulf %23, %24 : vector<16x128xf32>
    %26 = arith.addf %14, %25 : vector<16x128xf32>
    %c2 = arith.constant 2 : index
    %27 = memref.load %arg1[%c2] : memref<50xf32, #tpu.memory_space<smem>>
    %c2_8 = arith.constant 2 : index
    %28 = memref.load %arg2[%c2_8] : memref<50xf32, #tpu.memory_space<smem>>
    %c2_9 = arith.constant 2 : index
    %29 = memref.load %arg3[%c2_9] : memref<50xf32, #tpu.memory_space<smem>>
    %30 = vector.broadcast %27 : f32 to vector<16x128xf32>
    %31 = arith.mulf %1, %30 : vector<16x128xf32>
    %32 = vector.broadcast %28 : f32 to vector<16x128xf32>
    %33 = arith.addf %31, %32 : vector<16x128xf32>
    %cst_10 = arith.constant 0.000000e+00 : f32
    %34 = vector.broadcast %cst_10 : f32 to vector<16x128xf32>
    %35 = arith.maximumf %33, %34 : vector<16x128xf32>
    %36 = vector.broadcast %29 : f32 to vector<16x128xf32>
    %37 = arith.mulf %35, %36 : vector<16x128xf32>
    %38 = arith.addf %26, %37 : vector<16x128xf32>
    %c3 = arith.constant 3 : index
    %39 = memref.load %arg1[%c3] : memref<50xf32, #tpu.memory_space<smem>>
    %c3_11 = arith.constant 3 : index
    %40 = memref.load %arg2[%c3_11] : memref<50xf32, #tpu.memory_space<smem>>
    %c3_12 = arith.constant 3 : index
    %41 = memref.load %arg3[%c3_12] : memref<50xf32, #tpu.memory_space<smem>>
    %42 = vector.broadcast %39 : f32 to vector<16x128xf32>
    %43 = arith.mulf %1, %42 : vector<16x128xf32>
    %44 = vector.broadcast %40 : f32 to vector<16x128xf32>
    %45 = arith.addf %43, %44 : vector<16x128xf32>
    %cst_13 = arith.constant 0.000000e+00 : f32
    %46 = vector.broadcast %cst_13 : f32 to vector<16x128xf32>
    %47 = arith.maximumf %45, %46 : vector<16x128xf32>
    %48 = vector.broadcast %41 : f32 to vector<16x128xf32>
    %49 = arith.mulf %47, %48 : vector<16x128xf32>
    %50 = arith.addf %38, %49 : vector<16x128xf32>
    %c4 = arith.constant 4 : index
    %51 = memref.load %arg1[%c4] : memref<50xf32, #tpu.memory_space<smem>>
    %c4_14 = arith.constant 4 : index
    %52 = memref.load %arg2[%c4_14] : memref<50xf32, #tpu.memory_space<smem>>
    %c4_15 = arith.constant 4 : index
    %53 = memref.load %arg3[%c4_15] : memref<50xf32, #tpu.memory_space<smem>>
    %54 = vector.broadcast %51 : f32 to vector<16x128xf32>
    %55 = arith.mulf %1, %54 : vector<16x128xf32>
    %56 = vector.broadcast %52 : f32 to vector<16x128xf32>
    %57 = arith.addf %55, %56 : vector<16x128xf32>
    %cst_16 = arith.constant 0.000000e+00 : f32
    %58 = vector.broadcast %cst_16 : f32 to vector<16x128xf32>
    %59 = arith.maximumf %57, %58 : vector<16x128xf32>
    %60 = vector.broadcast %53 : f32 to vector<16x128xf32>
    %61 = arith.mulf %59, %60 : vector<16x128xf32>
    %62 = arith.addf %50, %61 : vector<16x128xf32>
    %c5 = arith.constant 5 : index
    %63 = memref.load %arg1[%c5] : memref<50xf32, #tpu.memory_space<smem>>
    %c5_17 = arith.constant 5 : index
    %64 = memref.load %arg2[%c5_17] : memref<50xf32, #tpu.memory_space<smem>>
    %c5_18 = arith.constant 5 : index
    %65 = memref.load %arg3[%c5_18] : memref<50xf32, #tpu.memory_space<smem>>
    %66 = vector.broadcast %63 : f32 to vector<16x128xf32>
    %67 = arith.mulf %1, %66 : vector<16x128xf32>
    %68 = vector.broadcast %64 : f32 to vector<16x128xf32>
    %69 = arith.addf %67, %68 : vector<16x128xf32>
    %cst_19 = arith.constant 0.000000e+00 : f32
    %70 = vector.broadcast %cst_19 : f32 to vector<16x128xf32>
    %71 = arith.maximumf %69, %70 : vector<16x128xf32>
    %72 = vector.broadcast %65 : f32 to vector<16x128xf32>
    %73 = arith.mulf %71, %72 : vector<16x128xf32>
    %74 = arith.addf %62, %73 : vector<16x128xf32>
    %c6 = arith.constant 6 : index
    %75 = memref.load %arg1[%c6] : memref<50xf32, #tpu.memory_space<smem>>
    %c6_20 = arith.constant 6 : index
    %76 = memref.load %arg2[%c6_20] : memref<50xf32, #tpu.memory_space<smem>>
    %c6_21 = arith.constant 6 : index
    %77 = memref.load %arg3[%c6_21] : memref<50xf32, #tpu.memory_space<smem>>
    %78 = vector.broadcast %75 : f32 to vector<16x128xf32>
    %79 = arith.mulf %1, %78 : vector<16x128xf32>
    %80 = vector.broadcast %76 : f32 to vector<16x128xf32>
    %81 = arith.addf %79, %80 : vector<16x128xf32>
    %cst_22 = arith.constant 0.000000e+00 : f32
    %82 = vector.broadcast %cst_22 : f32 to vector<16x128xf32>
    %83 = arith.maximumf %81, %82 : vector<16x128xf32>
    %84 = vector.broadcast %77 : f32 to vector<16x128xf32>
    %85 = arith.mulf %83, %84 : vector<16x128xf32>
    %86 = arith.addf %74, %85 : vector<16x128xf32>
    %c7 = arith.constant 7 : index
    %87 = memref.load %arg1[%c7] : memref<50xf32, #tpu.memory_space<smem>>
    %c7_23 = arith.constant 7 : index
    %88 = memref.load %arg2[%c7_23] : memref<50xf32, #tpu.memory_space<smem>>
    %c7_24 = arith.constant 7 : index
    %89 = memref.load %arg3[%c7_24] : memref<50xf32, #tpu.memory_space<smem>>
    %90 = vector.broadcast %87 : f32 to vector<16x128xf32>
    %91 = arith.mulf %1, %90 : vector<16x128xf32>
    %92 = vector.broadcast %88 : f32 to vector<16x128xf32>
    %93 = arith.addf %91, %92 : vector<16x128xf32>
    %cst_25 = arith.constant 0.000000e+00 : f32
    %94 = vector.broadcast %cst_25 : f32 to vector<16x128xf32>
    %95 = arith.maximumf %93, %94 : vector<16x128xf32>
    %96 = vector.broadcast %89 : f32 to vector<16x128xf32>
    %97 = arith.mulf %95, %96 : vector<16x128xf32>
    %98 = arith.addf %86, %97 : vector<16x128xf32>
    %c8 = arith.constant 8 : index
    %99 = memref.load %arg1[%c8] : memref<50xf32, #tpu.memory_space<smem>>
    %c8_26 = arith.constant 8 : index
    %100 = memref.load %arg2[%c8_26] : memref<50xf32, #tpu.memory_space<smem>>
    %c8_27 = arith.constant 8 : index
    %101 = memref.load %arg3[%c8_27] : memref<50xf32, #tpu.memory_space<smem>>
    %102 = vector.broadcast %99 : f32 to vector<16x128xf32>
    %103 = arith.mulf %1, %102 : vector<16x128xf32>
    %104 = vector.broadcast %100 : f32 to vector<16x128xf32>
    %105 = arith.addf %103, %104 : vector<16x128xf32>
    %cst_28 = arith.constant 0.000000e+00 : f32
    %106 = vector.broadcast %cst_28 : f32 to vector<16x128xf32>
    %107 = arith.maximumf %105, %106 : vector<16x128xf32>
    %108 = vector.broadcast %101 : f32 to vector<16x128xf32>
    %109 = arith.mulf %107, %108 : vector<16x128xf32>
    %110 = arith.addf %98, %109 : vector<16x128xf32>
    %c9 = arith.constant 9 : index
    %111 = memref.load %arg1[%c9] : memref<50xf32, #tpu.memory_space<smem>>
    %c9_29 = arith.constant 9 : index
    %112 = memref.load %arg2[%c9_29] : memref<50xf32, #tpu.memory_space<smem>>
    %c9_30 = arith.constant 9 : index
    %113 = memref.load %arg3[%c9_30] : memref<50xf32, #tpu.memory_space<smem>>
    %114 = vector.broadcast %111 : f32 to vector<16x128xf32>
    %115 = arith.mulf %1, %114 : vector<16x128xf32>
    %116 = vector.broadcast %112 : f32 to vector<16x128xf32>
    %117 = arith.addf %115, %116 : vector<16x128xf32>
    %cst_31 = arith.constant 0.000000e+00 : f32
    %118 = vector.broadcast %cst_31 : f32 to vector<16x128xf32>
    %119 = arith.maximumf %117, %118 : vector<16x128xf32>
    %120 = vector.broadcast %113 : f32 to vector<16x128xf32>
    %121 = arith.mulf %119, %120 : vector<16x128xf32>
    %122 = arith.addf %110, %121 : vector<16x128xf32>
    %c10 = arith.constant 10 : index
    %123 = memref.load %arg1[%c10] : memref<50xf32, #tpu.memory_space<smem>>
    %c10_32 = arith.constant 10 : index
    %124 = memref.load %arg2[%c10_32] : memref<50xf32, #tpu.memory_space<smem>>
    %c10_33 = arith.constant 10 : index
    %125 = memref.load %arg3[%c10_33] : memref<50xf32, #tpu.memory_space<smem>>
    %126 = vector.broadcast %123 : f32 to vector<16x128xf32>
    %127 = arith.mulf %1, %126 : vector<16x128xf32>
    %128 = vector.broadcast %124 : f32 to vector<16x128xf32>
    %129 = arith.addf %127, %128 : vector<16x128xf32>
    %cst_34 = arith.constant 0.000000e+00 : f32
    %130 = vector.broadcast %cst_34 : f32 to vector<16x128xf32>
    %131 = arith.maximumf %129, %130 : vector<16x128xf32>
    %132 = vector.broadcast %125 : f32 to vector<16x128xf32>
    %133 = arith.mulf %131, %132 : vector<16x128xf32>
    %134 = arith.addf %122, %133 : vector<16x128xf32>
    %c11 = arith.constant 11 : index
    %135 = memref.load %arg1[%c11] : memref<50xf32, #tpu.memory_space<smem>>
    %c11_35 = arith.constant 11 : index
    %136 = memref.load %arg2[%c11_35] : memref<50xf32, #tpu.memory_space<smem>>
    %c11_36 = arith.constant 11 : index
    %137 = memref.load %arg3[%c11_36] : memref<50xf32, #tpu.memory_space<smem>>
    %138 = vector.broadcast %135 : f32 to vector<16x128xf32>
    %139 = arith.mulf %1, %138 : vector<16x128xf32>
    %140 = vector.broadcast %136 : f32 to vector<16x128xf32>
    %141 = arith.addf %139, %140 : vector<16x128xf32>
    %cst_37 = arith.constant 0.000000e+00 : f32
    %142 = vector.broadcast %cst_37 : f32 to vector<16x128xf32>
    %143 = arith.maximumf %141, %142 : vector<16x128xf32>
    %144 = vector.broadcast %137 : f32 to vector<16x128xf32>
    %145 = arith.mulf %143, %144 : vector<16x128xf32>
    %146 = arith.addf %134, %145 : vector<16x128xf32>
    %c12 = arith.constant 12 : index
    %147 = memref.load %arg1[%c12] : memref<50xf32, #tpu.memory_space<smem>>
    %c12_38 = arith.constant 12 : index
    %148 = memref.load %arg2[%c12_38] : memref<50xf32, #tpu.memory_space<smem>>
    %c12_39 = arith.constant 12 : index
    %149 = memref.load %arg3[%c12_39] : memref<50xf32, #tpu.memory_space<smem>>
    %150 = vector.broadcast %147 : f32 to vector<16x128xf32>
    %151 = arith.mulf %1, %150 : vector<16x128xf32>
    %152 = vector.broadcast %148 : f32 to vector<16x128xf32>
    %153 = arith.addf %151, %152 : vector<16x128xf32>
    %cst_40 = arith.constant 0.000000e+00 : f32
    %154 = vector.broadcast %cst_40 : f32 to vector<16x128xf32>
    %155 = arith.maximumf %153, %154 : vector<16x128xf32>
    %156 = vector.broadcast %149 : f32 to vector<16x128xf32>
    %157 = arith.mulf %155, %156 : vector<16x128xf32>
    %158 = arith.addf %146, %157 : vector<16x128xf32>
    %c13 = arith.constant 13 : index
    %159 = memref.load %arg1[%c13] : memref<50xf32, #tpu.memory_space<smem>>
    %c13_41 = arith.constant 13 : index
    %160 = memref.load %arg2[%c13_41] : memref<50xf32, #tpu.memory_space<smem>>
    %c13_42 = arith.constant 13 : index
    %161 = memref.load %arg3[%c13_42] : memref<50xf32, #tpu.memory_space<smem>>
    %162 = vector.broadcast %159 : f32 to vector<16x128xf32>
    %163 = arith.mulf %1, %162 : vector<16x128xf32>
    %164 = vector.broadcast %160 : f32 to vector<16x128xf32>
    %165 = arith.addf %163, %164 : vector<16x128xf32>
    %cst_43 = arith.constant 0.000000e+00 : f32
    %166 = vector.broadcast %cst_43 : f32 to vector<16x128xf32>
    %167 = arith.maximumf %165, %166 : vector<16x128xf32>
    %168 = vector.broadcast %161 : f32 to vector<16x128xf32>
    %169 = arith.mulf %167, %168 : vector<16x128xf32>
    %170 = arith.addf %158, %169 : vector<16x128xf32>
    %c14 = arith.constant 14 : index
    %171 = memref.load %arg1[%c14] : memref<50xf32, #tpu.memory_space<smem>>
    %c14_44 = arith.constant 14 : index
    %172 = memref.load %arg2[%c14_44] : memref<50xf32, #tpu.memory_space<smem>>
    %c14_45 = arith.constant 14 : index
    %173 = memref.load %arg3[%c14_45] : memref<50xf32, #tpu.memory_space<smem>>
    %174 = vector.broadcast %171 : f32 to vector<16x128xf32>
    %175 = arith.mulf %1, %174 : vector<16x128xf32>
    %176 = vector.broadcast %172 : f32 to vector<16x128xf32>
    %177 = arith.addf %175, %176 : vector<16x128xf32>
    %cst_46 = arith.constant 0.000000e+00 : f32
    %178 = vector.broadcast %cst_46 : f32 to vector<16x128xf32>
    %179 = arith.maximumf %177, %178 : vector<16x128xf32>
    %180 = vector.broadcast %173 : f32 to vector<16x128xf32>
    %181 = arith.mulf %179, %180 : vector<16x128xf32>
    %182 = arith.addf %170, %181 : vector<16x128xf32>
    %c15 = arith.constant 15 : index
    %183 = memref.load %arg1[%c15] : memref<50xf32, #tpu.memory_space<smem>>
    %c15_47 = arith.constant 15 : index
    %184 = memref.load %arg2[%c15_47] : memref<50xf32, #tpu.memory_space<smem>>
    %c15_48 = arith.constant 15 : index
    %185 = memref.load %arg3[%c15_48] : memref<50xf32, #tpu.memory_space<smem>>
    %186 = vector.broadcast %183 : f32 to vector<16x128xf32>
    %187 = arith.mulf %1, %186 : vector<16x128xf32>
    %188 = vector.broadcast %184 : f32 to vector<16x128xf32>
    %189 = arith.addf %187, %188 : vector<16x128xf32>
    %cst_49 = arith.constant 0.000000e+00 : f32
    %190 = vector.broadcast %cst_49 : f32 to vector<16x128xf32>
    %191 = arith.maximumf %189, %190 : vector<16x128xf32>
    %192 = vector.broadcast %185 : f32 to vector<16x128xf32>
    %193 = arith.mulf %191, %192 : vector<16x128xf32>
    %194 = arith.addf %182, %193 : vector<16x128xf32>
    %c16 = arith.constant 16 : index
    %195 = memref.load %arg1[%c16] : memref<50xf32, #tpu.memory_space<smem>>
    %c16_50 = arith.constant 16 : index
    %196 = memref.load %arg2[%c16_50] : memref<50xf32, #tpu.memory_space<smem>>
    %c16_51 = arith.constant 16 : index
    %197 = memref.load %arg3[%c16_51] : memref<50xf32, #tpu.memory_space<smem>>
    %198 = vector.broadcast %195 : f32 to vector<16x128xf32>
    %199 = arith.mulf %1, %198 : vector<16x128xf32>
    %200 = vector.broadcast %196 : f32 to vector<16x128xf32>
    %201 = arith.addf %199, %200 : vector<16x128xf32>
    %cst_52 = arith.constant 0.000000e+00 : f32
    %202 = vector.broadcast %cst_52 : f32 to vector<16x128xf32>
    %203 = arith.maximumf %201, %202 : vector<16x128xf32>
    %204 = vector.broadcast %197 : f32 to vector<16x128xf32>
    %205 = arith.mulf %203, %204 : vector<16x128xf32>
    %206 = arith.addf %194, %205 : vector<16x128xf32>
    %c17 = arith.constant 17 : index
    %207 = memref.load %arg1[%c17] : memref<50xf32, #tpu.memory_space<smem>>
    %c17_53 = arith.constant 17 : index
    %208 = memref.load %arg2[%c17_53] : memref<50xf32, #tpu.memory_space<smem>>
    %c17_54 = arith.constant 17 : index
    %209 = memref.load %arg3[%c17_54] : memref<50xf32, #tpu.memory_space<smem>>
    %210 = vector.broadcast %207 : f32 to vector<16x128xf32>
    %211 = arith.mulf %1, %210 : vector<16x128xf32>
    %212 = vector.broadcast %208 : f32 to vector<16x128xf32>
    %213 = arith.addf %211, %212 : vector<16x128xf32>
    %cst_55 = arith.constant 0.000000e+00 : f32
    %214 = vector.broadcast %cst_55 : f32 to vector<16x128xf32>
    %215 = arith.maximumf %213, %214 : vector<16x128xf32>
    %216 = vector.broadcast %209 : f32 to vector<16x128xf32>
    %217 = arith.mulf %215, %216 : vector<16x128xf32>
    %218 = arith.addf %206, %217 : vector<16x128xf32>
    %c18 = arith.constant 18 : index
    %219 = memref.load %arg1[%c18] : memref<50xf32, #tpu.memory_space<smem>>
    %c18_56 = arith.constant 18 : index
    %220 = memref.load %arg2[%c18_56] : memref<50xf32, #tpu.memory_space<smem>>
    %c18_57 = arith.constant 18 : index
    %221 = memref.load %arg3[%c18_57] : memref<50xf32, #tpu.memory_space<smem>>
    %222 = vector.broadcast %219 : f32 to vector<16x128xf32>
    %223 = arith.mulf %1, %222 : vector<16x128xf32>
    %224 = vector.broadcast %220 : f32 to vector<16x128xf32>
    %225 = arith.addf %223, %224 : vector<16x128xf32>
    %cst_58 = arith.constant 0.000000e+00 : f32
    %226 = vector.broadcast %cst_58 : f32 to vector<16x128xf32>
    %227 = arith.maximumf %225, %226 : vector<16x128xf32>
    %228 = vector.broadcast %221 : f32 to vector<16x128xf32>
    %229 = arith.mulf %227, %228 : vector<16x128xf32>
    %230 = arith.addf %218, %229 : vector<16x128xf32>
    %c19 = arith.constant 19 : index
    %231 = memref.load %arg1[%c19] : memref<50xf32, #tpu.memory_space<smem>>
    %c19_59 = arith.constant 19 : index
    %232 = memref.load %arg2[%c19_59] : memref<50xf32, #tpu.memory_space<smem>>
    %c19_60 = arith.constant 19 : index
    %233 = memref.load %arg3[%c19_60] : memref<50xf32, #tpu.memory_space<smem>>
    %234 = vector.broadcast %231 : f32 to vector<16x128xf32>
    %235 = arith.mulf %1, %234 : vector<16x128xf32>
    %236 = vector.broadcast %232 : f32 to vector<16x128xf32>
    %237 = arith.addf %235, %236 : vector<16x128xf32>
    %cst_61 = arith.constant 0.000000e+00 : f32
    %238 = vector.broadcast %cst_61 : f32 to vector<16x128xf32>
    %239 = arith.maximumf %237, %238 : vector<16x128xf32>
    %240 = vector.broadcast %233 : f32 to vector<16x128xf32>
    %241 = arith.mulf %239, %240 : vector<16x128xf32>
    %242 = arith.addf %230, %241 : vector<16x128xf32>
    %c20 = arith.constant 20 : index
    %243 = memref.load %arg1[%c20] : memref<50xf32, #tpu.memory_space<smem>>
    %c20_62 = arith.constant 20 : index
    %244 = memref.load %arg2[%c20_62] : memref<50xf32, #tpu.memory_space<smem>>
    %c20_63 = arith.constant 20 : index
    %245 = memref.load %arg3[%c20_63] : memref<50xf32, #tpu.memory_space<smem>>
    %246 = vector.broadcast %243 : f32 to vector<16x128xf32>
    %247 = arith.mulf %1, %246 : vector<16x128xf32>
    %248 = vector.broadcast %244 : f32 to vector<16x128xf32>
    %249 = arith.addf %247, %248 : vector<16x128xf32>
    %cst_64 = arith.constant 0.000000e+00 : f32
    %250 = vector.broadcast %cst_64 : f32 to vector<16x128xf32>
    %251 = arith.maximumf %249, %250 : vector<16x128xf32>
    %252 = vector.broadcast %245 : f32 to vector<16x128xf32>
    %253 = arith.mulf %251, %252 : vector<16x128xf32>
    %254 = arith.addf %242, %253 : vector<16x128xf32>
    %c21 = arith.constant 21 : index
    %255 = memref.load %arg1[%c21] : memref<50xf32, #tpu.memory_space<smem>>
    %c21_65 = arith.constant 21 : index
    %256 = memref.load %arg2[%c21_65] : memref<50xf32, #tpu.memory_space<smem>>
    %c21_66 = arith.constant 21 : index
    %257 = memref.load %arg3[%c21_66] : memref<50xf32, #tpu.memory_space<smem>>
    %258 = vector.broadcast %255 : f32 to vector<16x128xf32>
    %259 = arith.mulf %1, %258 : vector<16x128xf32>
    %260 = vector.broadcast %256 : f32 to vector<16x128xf32>
    %261 = arith.addf %259, %260 : vector<16x128xf32>
    %cst_67 = arith.constant 0.000000e+00 : f32
    %262 = vector.broadcast %cst_67 : f32 to vector<16x128xf32>
    %263 = arith.maximumf %261, %262 : vector<16x128xf32>
    %264 = vector.broadcast %257 : f32 to vector<16x128xf32>
    %265 = arith.mulf %263, %264 : vector<16x128xf32>
    %266 = arith.addf %254, %265 : vector<16x128xf32>
    %c22 = arith.constant 22 : index
    %267 = memref.load %arg1[%c22] : memref<50xf32, #tpu.memory_space<smem>>
    %c22_68 = arith.constant 22 : index
    %268 = memref.load %arg2[%c22_68] : memref<50xf32, #tpu.memory_space<smem>>
    %c22_69 = arith.constant 22 : index
    %269 = memref.load %arg3[%c22_69] : memref<50xf32, #tpu.memory_space<smem>>
    %270 = vector.broadcast %267 : f32 to vector<16x128xf32>
    %271 = arith.mulf %1, %270 : vector<16x128xf32>
    %272 = vector.broadcast %268 : f32 to vector<16x128xf32>
    %273 = arith.addf %271, %272 : vector<16x128xf32>
    %cst_70 = arith.constant 0.000000e+00 : f32
    %274 = vector.broadcast %cst_70 : f32 to vector<16x128xf32>
    %275 = arith.maximumf %273, %274 : vector<16x128xf32>
    %276 = vector.broadcast %269 : f32 to vector<16x128xf32>
    %277 = arith.mulf %275, %276 : vector<16x128xf32>
    %278 = arith.addf %266, %277 : vector<16x128xf32>
    %c23 = arith.constant 23 : index
    %279 = memref.load %arg1[%c23] : memref<50xf32, #tpu.memory_space<smem>>
    %c23_71 = arith.constant 23 : index
    %280 = memref.load %arg2[%c23_71] : memref<50xf32, #tpu.memory_space<smem>>
    %c23_72 = arith.constant 23 : index
    %281 = memref.load %arg3[%c23_72] : memref<50xf32, #tpu.memory_space<smem>>
    %282 = vector.broadcast %279 : f32 to vector<16x128xf32>
    %283 = arith.mulf %1, %282 : vector<16x128xf32>
    %284 = vector.broadcast %280 : f32 to vector<16x128xf32>
    %285 = arith.addf %283, %284 : vector<16x128xf32>
    %cst_73 = arith.constant 0.000000e+00 : f32
    %286 = vector.broadcast %cst_73 : f32 to vector<16x128xf32>
    %287 = arith.maximumf %285, %286 : vector<16x128xf32>
    %288 = vector.broadcast %281 : f32 to vector<16x128xf32>
    %289 = arith.mulf %287, %288 : vector<16x128xf32>
    %290 = arith.addf %278, %289 : vector<16x128xf32>
    %c24 = arith.constant 24 : index
    %291 = memref.load %arg1[%c24] : memref<50xf32, #tpu.memory_space<smem>>
    %c24_74 = arith.constant 24 : index
    %292 = memref.load %arg2[%c24_74] : memref<50xf32, #tpu.memory_space<smem>>
    %c24_75 = arith.constant 24 : index
    %293 = memref.load %arg3[%c24_75] : memref<50xf32, #tpu.memory_space<smem>>
    %294 = vector.broadcast %291 : f32 to vector<16x128xf32>
    %295 = arith.mulf %1, %294 : vector<16x128xf32>
    %296 = vector.broadcast %292 : f32 to vector<16x128xf32>
    %297 = arith.addf %295, %296 : vector<16x128xf32>
    %cst_76 = arith.constant 0.000000e+00 : f32
    %298 = vector.broadcast %cst_76 : f32 to vector<16x128xf32>
    %299 = arith.maximumf %297, %298 : vector<16x128xf32>
    %300 = vector.broadcast %293 : f32 to vector<16x128xf32>
    %301 = arith.mulf %299, %300 : vector<16x128xf32>
    %302 = arith.addf %290, %301 : vector<16x128xf32>
    %c25 = arith.constant 25 : index
    %303 = memref.load %arg1[%c25] : memref<50xf32, #tpu.memory_space<smem>>
    %c25_77 = arith.constant 25 : index
    %304 = memref.load %arg2[%c25_77] : memref<50xf32, #tpu.memory_space<smem>>
    %c25_78 = arith.constant 25 : index
    %305 = memref.load %arg3[%c25_78] : memref<50xf32, #tpu.memory_space<smem>>
    %306 = vector.broadcast %303 : f32 to vector<16x128xf32>
    %307 = arith.mulf %1, %306 : vector<16x128xf32>
    %308 = vector.broadcast %304 : f32 to vector<16x128xf32>
    %309 = arith.addf %307, %308 : vector<16x128xf32>
    %cst_79 = arith.constant 0.000000e+00 : f32
    %310 = vector.broadcast %cst_79 : f32 to vector<16x128xf32>
    %311 = arith.maximumf %309, %310 : vector<16x128xf32>
    %312 = vector.broadcast %305 : f32 to vector<16x128xf32>
    %313 = arith.mulf %311, %312 : vector<16x128xf32>
    %314 = arith.addf %302, %313 : vector<16x128xf32>
    %c26 = arith.constant 26 : index
    %315 = memref.load %arg1[%c26] : memref<50xf32, #tpu.memory_space<smem>>
    %c26_80 = arith.constant 26 : index
    %316 = memref.load %arg2[%c26_80] : memref<50xf32, #tpu.memory_space<smem>>
    %c26_81 = arith.constant 26 : index
    %317 = memref.load %arg3[%c26_81] : memref<50xf32, #tpu.memory_space<smem>>
    %318 = vector.broadcast %315 : f32 to vector<16x128xf32>
    %319 = arith.mulf %1, %318 : vector<16x128xf32>
    %320 = vector.broadcast %316 : f32 to vector<16x128xf32>
    %321 = arith.addf %319, %320 : vector<16x128xf32>
    %cst_82 = arith.constant 0.000000e+00 : f32
    %322 = vector.broadcast %cst_82 : f32 to vector<16x128xf32>
    %323 = arith.maximumf %321, %322 : vector<16x128xf32>
    %324 = vector.broadcast %317 : f32 to vector<16x128xf32>
    %325 = arith.mulf %323, %324 : vector<16x128xf32>
    %326 = arith.addf %314, %325 : vector<16x128xf32>
    %c27 = arith.constant 27 : index
    %327 = memref.load %arg1[%c27] : memref<50xf32, #tpu.memory_space<smem>>
    %c27_83 = arith.constant 27 : index
    %328 = memref.load %arg2[%c27_83] : memref<50xf32, #tpu.memory_space<smem>>
    %c27_84 = arith.constant 27 : index
    %329 = memref.load %arg3[%c27_84] : memref<50xf32, #tpu.memory_space<smem>>
    %330 = vector.broadcast %327 : f32 to vector<16x128xf32>
    %331 = arith.mulf %1, %330 : vector<16x128xf32>
    %332 = vector.broadcast %328 : f32 to vector<16x128xf32>
    %333 = arith.addf %331, %332 : vector<16x128xf32>
    %cst_85 = arith.constant 0.000000e+00 : f32
    %334 = vector.broadcast %cst_85 : f32 to vector<16x128xf32>
    %335 = arith.maximumf %333, %334 : vector<16x128xf32>
    %336 = vector.broadcast %329 : f32 to vector<16x128xf32>
    %337 = arith.mulf %335, %336 : vector<16x128xf32>
    %338 = arith.addf %326, %337 : vector<16x128xf32>
    %c28 = arith.constant 28 : index
    %339 = memref.load %arg1[%c28] : memref<50xf32, #tpu.memory_space<smem>>
    %c28_86 = arith.constant 28 : index
    %340 = memref.load %arg2[%c28_86] : memref<50xf32, #tpu.memory_space<smem>>
    %c28_87 = arith.constant 28 : index
    %341 = memref.load %arg3[%c28_87] : memref<50xf32, #tpu.memory_space<smem>>
    %342 = vector.broadcast %339 : f32 to vector<16x128xf32>
    %343 = arith.mulf %1, %342 : vector<16x128xf32>
    %344 = vector.broadcast %340 : f32 to vector<16x128xf32>
    %345 = arith.addf %343, %344 : vector<16x128xf32>
    %cst_88 = arith.constant 0.000000e+00 : f32
    %346 = vector.broadcast %cst_88 : f32 to vector<16x128xf32>
    %347 = arith.maximumf %345, %346 : vector<16x128xf32>
    %348 = vector.broadcast %341 : f32 to vector<16x128xf32>
    %349 = arith.mulf %347, %348 : vector<16x128xf32>
    %350 = arith.addf %338, %349 : vector<16x128xf32>
    %c29 = arith.constant 29 : index
    %351 = memref.load %arg1[%c29] : memref<50xf32, #tpu.memory_space<smem>>
    %c29_89 = arith.constant 29 : index
    %352 = memref.load %arg2[%c29_89] : memref<50xf32, #tpu.memory_space<smem>>
    %c29_90 = arith.constant 29 : index
    %353 = memref.load %arg3[%c29_90] : memref<50xf32, #tpu.memory_space<smem>>
    %354 = vector.broadcast %351 : f32 to vector<16x128xf32>
    %355 = arith.mulf %1, %354 : vector<16x128xf32>
    %356 = vector.broadcast %352 : f32 to vector<16x128xf32>
    %357 = arith.addf %355, %356 : vector<16x128xf32>
    %cst_91 = arith.constant 0.000000e+00 : f32
    %358 = vector.broadcast %cst_91 : f32 to vector<16x128xf32>
    %359 = arith.maximumf %357, %358 : vector<16x128xf32>
    %360 = vector.broadcast %353 : f32 to vector<16x128xf32>
    %361 = arith.mulf %359, %360 : vector<16x128xf32>
    %362 = arith.addf %350, %361 : vector<16x128xf32>
    %c30 = arith.constant 30 : index
    %363 = memref.load %arg1[%c30] : memref<50xf32, #tpu.memory_space<smem>>
    %c30_92 = arith.constant 30 : index
    %364 = memref.load %arg2[%c30_92] : memref<50xf32, #tpu.memory_space<smem>>
    %c30_93 = arith.constant 30 : index
    %365 = memref.load %arg3[%c30_93] : memref<50xf32, #tpu.memory_space<smem>>
    %366 = vector.broadcast %363 : f32 to vector<16x128xf32>
    %367 = arith.mulf %1, %366 : vector<16x128xf32>
    %368 = vector.broadcast %364 : f32 to vector<16x128xf32>
    %369 = arith.addf %367, %368 : vector<16x128xf32>
    %cst_94 = arith.constant 0.000000e+00 : f32
    %370 = vector.broadcast %cst_94 : f32 to vector<16x128xf32>
    %371 = arith.maximumf %369, %370 : vector<16x128xf32>
    %372 = vector.broadcast %365 : f32 to vector<16x128xf32>
    %373 = arith.mulf %371, %372 : vector<16x128xf32>
    %374 = arith.addf %362, %373 : vector<16x128xf32>
    %c31 = arith.constant 31 : index
    %375 = memref.load %arg1[%c31] : memref<50xf32, #tpu.memory_space<smem>>
    %c31_95 = arith.constant 31 : index
    %376 = memref.load %arg2[%c31_95] : memref<50xf32, #tpu.memory_space<smem>>
    %c31_96 = arith.constant 31 : index
    %377 = memref.load %arg3[%c31_96] : memref<50xf32, #tpu.memory_space<smem>>
    %378 = vector.broadcast %375 : f32 to vector<16x128xf32>
    %379 = arith.mulf %1, %378 : vector<16x128xf32>
    %380 = vector.broadcast %376 : f32 to vector<16x128xf32>
    %381 = arith.addf %379, %380 : vector<16x128xf32>
    %cst_97 = arith.constant 0.000000e+00 : f32
    %382 = vector.broadcast %cst_97 : f32 to vector<16x128xf32>
    %383 = arith.maximumf %381, %382 : vector<16x128xf32>
    %384 = vector.broadcast %377 : f32 to vector<16x128xf32>
    %385 = arith.mulf %383, %384 : vector<16x128xf32>
    %386 = arith.addf %374, %385 : vector<16x128xf32>
    %c32 = arith.constant 32 : index
    %387 = memref.load %arg1[%c32] : memref<50xf32, #tpu.memory_space<smem>>
    %c32_98 = arith.constant 32 : index
    %388 = memref.load %arg2[%c32_98] : memref<50xf32, #tpu.memory_space<smem>>
    %c32_99 = arith.constant 32 : index
    %389 = memref.load %arg3[%c32_99] : memref<50xf32, #tpu.memory_space<smem>>
    %390 = vector.broadcast %387 : f32 to vector<16x128xf32>
    %391 = arith.mulf %1, %390 : vector<16x128xf32>
    %392 = vector.broadcast %388 : f32 to vector<16x128xf32>
    %393 = arith.addf %391, %392 : vector<16x128xf32>
    %cst_100 = arith.constant 0.000000e+00 : f32
    %394 = vector.broadcast %cst_100 : f32 to vector<16x128xf32>
    %395 = arith.maximumf %393, %394 : vector<16x128xf32>
    %396 = vector.broadcast %389 : f32 to vector<16x128xf32>
    %397 = arith.mulf %395, %396 : vector<16x128xf32>
    %398 = arith.addf %386, %397 : vector<16x128xf32>
    %c33 = arith.constant 33 : index
    %399 = memref.load %arg1[%c33] : memref<50xf32, #tpu.memory_space<smem>>
    %c33_101 = arith.constant 33 : index
    %400 = memref.load %arg2[%c33_101] : memref<50xf32, #tpu.memory_space<smem>>
    %c33_102 = arith.constant 33 : index
    %401 = memref.load %arg3[%c33_102] : memref<50xf32, #tpu.memory_space<smem>>
    %402 = vector.broadcast %399 : f32 to vector<16x128xf32>
    %403 = arith.mulf %1, %402 : vector<16x128xf32>
    %404 = vector.broadcast %400 : f32 to vector<16x128xf32>
    %405 = arith.addf %403, %404 : vector<16x128xf32>
    %cst_103 = arith.constant 0.000000e+00 : f32
    %406 = vector.broadcast %cst_103 : f32 to vector<16x128xf32>
    %407 = arith.maximumf %405, %406 : vector<16x128xf32>
    %408 = vector.broadcast %401 : f32 to vector<16x128xf32>
    %409 = arith.mulf %407, %408 : vector<16x128xf32>
    %410 = arith.addf %398, %409 : vector<16x128xf32>
    %c34 = arith.constant 34 : index
    %411 = memref.load %arg1[%c34] : memref<50xf32, #tpu.memory_space<smem>>
    %c34_104 = arith.constant 34 : index
    %412 = memref.load %arg2[%c34_104] : memref<50xf32, #tpu.memory_space<smem>>
    %c34_105 = arith.constant 34 : index
    %413 = memref.load %arg3[%c34_105] : memref<50xf32, #tpu.memory_space<smem>>
    %414 = vector.broadcast %411 : f32 to vector<16x128xf32>
    %415 = arith.mulf %1, %414 : vector<16x128xf32>
    %416 = vector.broadcast %412 : f32 to vector<16x128xf32>
    %417 = arith.addf %415, %416 : vector<16x128xf32>
    %cst_106 = arith.constant 0.000000e+00 : f32
    %418 = vector.broadcast %cst_106 : f32 to vector<16x128xf32>
    %419 = arith.maximumf %417, %418 : vector<16x128xf32>
    %420 = vector.broadcast %413 : f32 to vector<16x128xf32>
    %421 = arith.mulf %419, %420 : vector<16x128xf32>
    %422 = arith.addf %410, %421 : vector<16x128xf32>
    %c35 = arith.constant 35 : index
    %423 = memref.load %arg1[%c35] : memref<50xf32, #tpu.memory_space<smem>>
    %c35_107 = arith.constant 35 : index
    %424 = memref.load %arg2[%c35_107] : memref<50xf32, #tpu.memory_space<smem>>
    %c35_108 = arith.constant 35 : index
    %425 = memref.load %arg3[%c35_108] : memref<50xf32, #tpu.memory_space<smem>>
    %426 = vector.broadcast %423 : f32 to vector<16x128xf32>
    %427 = arith.mulf %1, %426 : vector<16x128xf32>
    %428 = vector.broadcast %424 : f32 to vector<16x128xf32>
    %429 = arith.addf %427, %428 : vector<16x128xf32>
    %cst_109 = arith.constant 0.000000e+00 : f32
    %430 = vector.broadcast %cst_109 : f32 to vector<16x128xf32>
    %431 = arith.maximumf %429, %430 : vector<16x128xf32>
    %432 = vector.broadcast %425 : f32 to vector<16x128xf32>
    %433 = arith.mulf %431, %432 : vector<16x128xf32>
    %434 = arith.addf %422, %433 : vector<16x128xf32>
    %c36 = arith.constant 36 : index
    %435 = memref.load %arg1[%c36] : memref<50xf32, #tpu.memory_space<smem>>
    %c36_110 = arith.constant 36 : index
    %436 = memref.load %arg2[%c36_110] : memref<50xf32, #tpu.memory_space<smem>>
    %c36_111 = arith.constant 36 : index
    %437 = memref.load %arg3[%c36_111] : memref<50xf32, #tpu.memory_space<smem>>
    %438 = vector.broadcast %435 : f32 to vector<16x128xf32>
    %439 = arith.mulf %1, %438 : vector<16x128xf32>
    %440 = vector.broadcast %436 : f32 to vector<16x128xf32>
    %441 = arith.addf %439, %440 : vector<16x128xf32>
    %cst_112 = arith.constant 0.000000e+00 : f32
    %442 = vector.broadcast %cst_112 : f32 to vector<16x128xf32>
    %443 = arith.maximumf %441, %442 : vector<16x128xf32>
    %444 = vector.broadcast %437 : f32 to vector<16x128xf32>
    %445 = arith.mulf %443, %444 : vector<16x128xf32>
    %446 = arith.addf %434, %445 : vector<16x128xf32>
    %c37 = arith.constant 37 : index
    %447 = memref.load %arg1[%c37] : memref<50xf32, #tpu.memory_space<smem>>
    %c37_113 = arith.constant 37 : index
    %448 = memref.load %arg2[%c37_113] : memref<50xf32, #tpu.memory_space<smem>>
    %c37_114 = arith.constant 37 : index
    %449 = memref.load %arg3[%c37_114] : memref<50xf32, #tpu.memory_space<smem>>
    %450 = vector.broadcast %447 : f32 to vector<16x128xf32>
    %451 = arith.mulf %1, %450 : vector<16x128xf32>
    %452 = vector.broadcast %448 : f32 to vector<16x128xf32>
    %453 = arith.addf %451, %452 : vector<16x128xf32>
    %cst_115 = arith.constant 0.000000e+00 : f32
    %454 = vector.broadcast %cst_115 : f32 to vector<16x128xf32>
    %455 = arith.maximumf %453, %454 : vector<16x128xf32>
    %456 = vector.broadcast %449 : f32 to vector<16x128xf32>
    %457 = arith.mulf %455, %456 : vector<16x128xf32>
    %458 = arith.addf %446, %457 : vector<16x128xf32>
    %c38 = arith.constant 38 : index
    %459 = memref.load %arg1[%c38] : memref<50xf32, #tpu.memory_space<smem>>
    %c38_116 = arith.constant 38 : index
    %460 = memref.load %arg2[%c38_116] : memref<50xf32, #tpu.memory_space<smem>>
    %c38_117 = arith.constant 38 : index
    %461 = memref.load %arg3[%c38_117] : memref<50xf32, #tpu.memory_space<smem>>
    %462 = vector.broadcast %459 : f32 to vector<16x128xf32>
    %463 = arith.mulf %1, %462 : vector<16x128xf32>
    %464 = vector.broadcast %460 : f32 to vector<16x128xf32>
    %465 = arith.addf %463, %464 : vector<16x128xf32>
    %cst_118 = arith.constant 0.000000e+00 : f32
    %466 = vector.broadcast %cst_118 : f32 to vector<16x128xf32>
    %467 = arith.maximumf %465, %466 : vector<16x128xf32>
    %468 = vector.broadcast %461 : f32 to vector<16x128xf32>
    %469 = arith.mulf %467, %468 : vector<16x128xf32>
    %470 = arith.addf %458, %469 : vector<16x128xf32>
    %c39 = arith.constant 39 : index
    %471 = memref.load %arg1[%c39] : memref<50xf32, #tpu.memory_space<smem>>
    %c39_119 = arith.constant 39 : index
    %472 = memref.load %arg2[%c39_119] : memref<50xf32, #tpu.memory_space<smem>>
    %c39_120 = arith.constant 39 : index
    %473 = memref.load %arg3[%c39_120] : memref<50xf32, #tpu.memory_space<smem>>
    %474 = vector.broadcast %471 : f32 to vector<16x128xf32>
    %475 = arith.mulf %1, %474 : vector<16x128xf32>
    %476 = vector.broadcast %472 : f32 to vector<16x128xf32>
    %477 = arith.addf %475, %476 : vector<16x128xf32>
    %cst_121 = arith.constant 0.000000e+00 : f32
    %478 = vector.broadcast %cst_121 : f32 to vector<16x128xf32>
    %479 = arith.maximumf %477, %478 : vector<16x128xf32>
    %480 = vector.broadcast %473 : f32 to vector<16x128xf32>
    %481 = arith.mulf %479, %480 : vector<16x128xf32>
    %482 = arith.addf %470, %481 : vector<16x128xf32>
    %c40 = arith.constant 40 : index
    %483 = memref.load %arg1[%c40] : memref<50xf32, #tpu.memory_space<smem>>
    %c40_122 = arith.constant 40 : index
    %484 = memref.load %arg2[%c40_122] : memref<50xf32, #tpu.memory_space<smem>>
    %c40_123 = arith.constant 40 : index
    %485 = memref.load %arg3[%c40_123] : memref<50xf32, #tpu.memory_space<smem>>
    %486 = vector.broadcast %483 : f32 to vector<16x128xf32>
    %487 = arith.mulf %1, %486 : vector<16x128xf32>
    %488 = vector.broadcast %484 : f32 to vector<16x128xf32>
    %489 = arith.addf %487, %488 : vector<16x128xf32>
    %cst_124 = arith.constant 0.000000e+00 : f32
    %490 = vector.broadcast %cst_124 : f32 to vector<16x128xf32>
    %491 = arith.maximumf %489, %490 : vector<16x128xf32>
    %492 = vector.broadcast %485 : f32 to vector<16x128xf32>
    %493 = arith.mulf %491, %492 : vector<16x128xf32>
    %494 = arith.addf %482, %493 : vector<16x128xf32>
    %c41 = arith.constant 41 : index
    %495 = memref.load %arg1[%c41] : memref<50xf32, #tpu.memory_space<smem>>
    %c41_125 = arith.constant 41 : index
    %496 = memref.load %arg2[%c41_125] : memref<50xf32, #tpu.memory_space<smem>>
    %c41_126 = arith.constant 41 : index
    %497 = memref.load %arg3[%c41_126] : memref<50xf32, #tpu.memory_space<smem>>
    %498 = vector.broadcast %495 : f32 to vector<16x128xf32>
    %499 = arith.mulf %1, %498 : vector<16x128xf32>
    %500 = vector.broadcast %496 : f32 to vector<16x128xf32>
    %501 = arith.addf %499, %500 : vector<16x128xf32>
    %cst_127 = arith.constant 0.000000e+00 : f32
    %502 = vector.broadcast %cst_127 : f32 to vector<16x128xf32>
    %503 = arith.maximumf %501, %502 : vector<16x128xf32>
    %504 = vector.broadcast %497 : f32 to vector<16x128xf32>
    %505 = arith.mulf %503, %504 : vector<16x128xf32>
    %506 = arith.addf %494, %505 : vector<16x128xf32>
    %c42 = arith.constant 42 : index
    %507 = memref.load %arg1[%c42] : memref<50xf32, #tpu.memory_space<smem>>
    %c42_128 = arith.constant 42 : index
    %508 = memref.load %arg2[%c42_128] : memref<50xf32, #tpu.memory_space<smem>>
    %c42_129 = arith.constant 42 : index
    %509 = memref.load %arg3[%c42_129] : memref<50xf32, #tpu.memory_space<smem>>
    %510 = vector.broadcast %507 : f32 to vector<16x128xf32>
    %511 = arith.mulf %1, %510 : vector<16x128xf32>
    %512 = vector.broadcast %508 : f32 to vector<16x128xf32>
    %513 = arith.addf %511, %512 : vector<16x128xf32>
    %cst_130 = arith.constant 0.000000e+00 : f32
    %514 = vector.broadcast %cst_130 : f32 to vector<16x128xf32>
    %515 = arith.maximumf %513, %514 : vector<16x128xf32>
    %516 = vector.broadcast %509 : f32 to vector<16x128xf32>
    %517 = arith.mulf %515, %516 : vector<16x128xf32>
    %518 = arith.addf %506, %517 : vector<16x128xf32>
    %c43 = arith.constant 43 : index
    %519 = memref.load %arg1[%c43] : memref<50xf32, #tpu.memory_space<smem>>
    %c43_131 = arith.constant 43 : index
    %520 = memref.load %arg2[%c43_131] : memref<50xf32, #tpu.memory_space<smem>>
    %c43_132 = arith.constant 43 : index
    %521 = memref.load %arg3[%c43_132] : memref<50xf32, #tpu.memory_space<smem>>
    %522 = vector.broadcast %519 : f32 to vector<16x128xf32>
    %523 = arith.mulf %1, %522 : vector<16x128xf32>
    %524 = vector.broadcast %520 : f32 to vector<16x128xf32>
    %525 = arith.addf %523, %524 : vector<16x128xf32>
    %cst_133 = arith.constant 0.000000e+00 : f32
    %526 = vector.broadcast %cst_133 : f32 to vector<16x128xf32>
    %527 = arith.maximumf %525, %526 : vector<16x128xf32>
    %528 = vector.broadcast %521 : f32 to vector<16x128xf32>
    %529 = arith.mulf %527, %528 : vector<16x128xf32>
    %530 = arith.addf %518, %529 : vector<16x128xf32>
    %c44 = arith.constant 44 : index
    %531 = memref.load %arg1[%c44] : memref<50xf32, #tpu.memory_space<smem>>
    %c44_134 = arith.constant 44 : index
    %532 = memref.load %arg2[%c44_134] : memref<50xf32, #tpu.memory_space<smem>>
    %c44_135 = arith.constant 44 : index
    %533 = memref.load %arg3[%c44_135] : memref<50xf32, #tpu.memory_space<smem>>
    %534 = vector.broadcast %531 : f32 to vector<16x128xf32>
    %535 = arith.mulf %1, %534 : vector<16x128xf32>
    %536 = vector.broadcast %532 : f32 to vector<16x128xf32>
    %537 = arith.addf %535, %536 : vector<16x128xf32>
    %cst_136 = arith.constant 0.000000e+00 : f32
    %538 = vector.broadcast %cst_136 : f32 to vector<16x128xf32>
    %539 = arith.maximumf %537, %538 : vector<16x128xf32>
    %540 = vector.broadcast %533 : f32 to vector<16x128xf32>
    %541 = arith.mulf %539, %540 : vector<16x128xf32>
    %542 = arith.addf %530, %541 : vector<16x128xf32>
    %c45 = arith.constant 45 : index
    %543 = memref.load %arg1[%c45] : memref<50xf32, #tpu.memory_space<smem>>
    %c45_137 = arith.constant 45 : index
    %544 = memref.load %arg2[%c45_137] : memref<50xf32, #tpu.memory_space<smem>>
    %c45_138 = arith.constant 45 : index
    %545 = memref.load %arg3[%c45_138] : memref<50xf32, #tpu.memory_space<smem>>
    %546 = vector.broadcast %543 : f32 to vector<16x128xf32>
    %547 = arith.mulf %1, %546 : vector<16x128xf32>
    %548 = vector.broadcast %544 : f32 to vector<16x128xf32>
    %549 = arith.addf %547, %548 : vector<16x128xf32>
    %cst_139 = arith.constant 0.000000e+00 : f32
    %550 = vector.broadcast %cst_139 : f32 to vector<16x128xf32>
    %551 = arith.maximumf %549, %550 : vector<16x128xf32>
    %552 = vector.broadcast %545 : f32 to vector<16x128xf32>
    %553 = arith.mulf %551, %552 : vector<16x128xf32>
    %554 = arith.addf %542, %553 : vector<16x128xf32>
    %c46 = arith.constant 46 : index
    %555 = memref.load %arg1[%c46] : memref<50xf32, #tpu.memory_space<smem>>
    %c46_140 = arith.constant 46 : index
    %556 = memref.load %arg2[%c46_140] : memref<50xf32, #tpu.memory_space<smem>>
    %c46_141 = arith.constant 46 : index
    %557 = memref.load %arg3[%c46_141] : memref<50xf32, #tpu.memory_space<smem>>
    %558 = vector.broadcast %555 : f32 to vector<16x128xf32>
    %559 = arith.mulf %1, %558 : vector<16x128xf32>
    %560 = vector.broadcast %556 : f32 to vector<16x128xf32>
    %561 = arith.addf %559, %560 : vector<16x128xf32>
    %cst_142 = arith.constant 0.000000e+00 : f32
    %562 = vector.broadcast %cst_142 : f32 to vector<16x128xf32>
    %563 = arith.maximumf %561, %562 : vector<16x128xf32>
    %564 = vector.broadcast %557 : f32 to vector<16x128xf32>
    %565 = arith.mulf %563, %564 : vector<16x128xf32>
    %566 = arith.addf %554, %565 : vector<16x128xf32>
    %c47 = arith.constant 47 : index
    %567 = memref.load %arg1[%c47] : memref<50xf32, #tpu.memory_space<smem>>
    %c47_143 = arith.constant 47 : index
    %568 = memref.load %arg2[%c47_143] : memref<50xf32, #tpu.memory_space<smem>>
    %c47_144 = arith.constant 47 : index
    %569 = memref.load %arg3[%c47_144] : memref<50xf32, #tpu.memory_space<smem>>
    %570 = vector.broadcast %567 : f32 to vector<16x128xf32>
    %571 = arith.mulf %1, %570 : vector<16x128xf32>
    %572 = vector.broadcast %568 : f32 to vector<16x128xf32>
    %573 = arith.addf %571, %572 : vector<16x128xf32>
    %cst_145 = arith.constant 0.000000e+00 : f32
    %574 = vector.broadcast %cst_145 : f32 to vector<16x128xf32>
    %575 = arith.maximumf %573, %574 : vector<16x128xf32>
    %576 = vector.broadcast %569 : f32 to vector<16x128xf32>
    %577 = arith.mulf %575, %576 : vector<16x128xf32>
    %578 = arith.addf %566, %577 : vector<16x128xf32>
    %c48 = arith.constant 48 : index
    %579 = memref.load %arg1[%c48] : memref<50xf32, #tpu.memory_space<smem>>
    %c48_146 = arith.constant 48 : index
    %580 = memref.load %arg2[%c48_146] : memref<50xf32, #tpu.memory_space<smem>>
    %c48_147 = arith.constant 48 : index
    %581 = memref.load %arg3[%c48_147] : memref<50xf32, #tpu.memory_space<smem>>
    %582 = vector.broadcast %579 : f32 to vector<16x128xf32>
    %583 = arith.mulf %1, %582 : vector<16x128xf32>
    %584 = vector.broadcast %580 : f32 to vector<16x128xf32>
    %585 = arith.addf %583, %584 : vector<16x128xf32>
    %cst_148 = arith.constant 0.000000e+00 : f32
    %586 = vector.broadcast %cst_148 : f32 to vector<16x128xf32>
    %587 = arith.maximumf %585, %586 : vector<16x128xf32>
    %588 = vector.broadcast %581 : f32 to vector<16x128xf32>
    %589 = arith.mulf %587, %588 : vector<16x128xf32>
    %590 = arith.addf %578, %589 : vector<16x128xf32>
    %c49 = arith.constant 49 : index
    %591 = memref.load %arg1[%c49] : memref<50xf32, #tpu.memory_space<smem>>
    %c49_149 = arith.constant 49 : index
    %592 = memref.load %arg2[%c49_149] : memref<50xf32, #tpu.memory_space<smem>>
    %c49_150 = arith.constant 49 : index
    %593 = memref.load %arg3[%c49_150] : memref<50xf32, #tpu.memory_space<smem>>
    %594 = vector.broadcast %591 : f32 to vector<16x128xf32>
    %595 = arith.mulf %1, %594 : vector<16x128xf32>
    %596 = vector.broadcast %592 : f32 to vector<16x128xf32>
    %597 = arith.addf %595, %596 : vector<16x128xf32>
    %cst_151 = arith.constant 0.000000e+00 : f32
    %598 = vector.broadcast %cst_151 : f32 to vector<16x128xf32>
    %599 = arith.maximumf %597, %598 : vector<16x128xf32>
    %600 = vector.broadcast %593 : f32 to vector<16x128xf32>
    %601 = arith.mulf %599, %600 : vector<16x128xf32>
    %602 = arith.addf %590, %601 : vector<16x128xf32>
    %c0_152 = arith.constant 0 : index
    %c0_153 = arith.constant 0 : index
    %603 = vector.load %arg6[%c0_152, %c0_153] : memref<16x128xf32, #tpu.memory_space<vmem>>, vector<16x128xf32>
    tpu.vector_store %arg6[%c0_152, %c0_153], %602 {strides = array<i32>} : memref<16x128xf32, #tpu.memory_space<vmem>>, vector<16x128xf32>,
    return
  }
  func.func @transform_0(%arg0: i32) -> i32 {
    %c0_i32 = arith.constant 0 : i32
    %c0_i32_0 = arith.constant 0 : i32
    return %c0_i32 : i32
  }
  func.func @transform_1(%arg0: i32) -> i32 {
    %c0_i32 = arith.constant 0 : i32
    %c0_i32_0 = arith.constant 0 : i32
    return %c0_i32 : i32
  }
  func.func @transform_2(%arg0: i32) -> i32 {
    %c0_i32 = arith.constant 0 : i32
    %c0_i32_0 = arith.constant 0 : i32
    return %c0_i32 : i32
  }
  func.func @transform_3(%arg0: i32) -> i32 {
    %c0_i32 = arith.constant 0 : i32
    %c0_i32_0 = arith.constant 0 : i32
    return %c0_i32 : i32
  }
  func.func @transform_4(%arg0: i32) -> (i32, i32) {
    %c0_i32 = arith.constant 0 : i32
    %c0_i32_0 = arith.constant 0 : i32
    return %arg0, %c0_i32 : i32, i32
  }
  func.func @transform_5(%arg0: i32) -> (i32, i32) {
    %c0_i32 = arith.constant 0 : i32
    %c0_i32_0 = arith.constant 0 : i32
    return %arg0, %c0_i32 : i32, i32
  }
}

</mosaic_0001>

<bundles_post_ra>
// kernel: tpu_custom_call.1
= control target key start
LH: loop header
LB: loop body
LE: loop exit
PB: predicated region body
PF: predicated region fallthrough
CT: control target
= control target key end

     0   :  { %11 = vsyncpa [#allocation6], 0  ;;  %s1753_s0 = inlined_call_operand.vmem [shape: f32[50], index: 0, kind: input, shape index: {}]   ;;  %s1754_s1 = inlined_call_operand.vmem [shape: f32[50], index: 1, kind: input, shape index: {}]   ;;  %s1755_s2 = inlined_call_operand.vmem [shape: f32[50], index: 2, kind: input, shape index: {}]   ;;  %s1756_s3 = inlined_call_operand.<no memory space> [shape: f32[1], index: 3, kind: input, shape index: {}]   ;;  %s1757_s4 = inlined_call_operand.hbm [shape: f32[16,128], index: 4, kind: input, shape index: {}]   ;;  %s1758_s5 = inlined_call_operand.hbm [shape: f32[16,128], index: 5, kind: output, shape index: {}]  }
   0x1   :  { %12 = vsyncpa [#allocation8], 0 }
   0x2   :  { %13 = vsyncpa [#allocation4], 0  ;;  %s29_s20 = sshll.u32 %s1754_s1, 4  ;;  %s30_s20 = int_to_ptr.vmem [resolvable:$true] %s29_s20 }
   0x3   :  { %14 = vsyncpa [#allocation5], 0  ;;  %s20_s23 = sshll.u32 %s1753_s0, 4  ;;  %s1149_s24 = smov [#allocation7]   ;;  %s21_s23 = int_to_ptr.vmem [resolvable:$true] %s20_s23 }
   0x4   :  { %32 = dma.vmem_to_smem %s30_s20, 16, %s1149_s24, [#allocation8]  }
   0x5   :  { %s1150_s25 = smov [#allocation3]   ;;  %s38_s28 = sshll.u32 %s1755_s2, 4  ;;  %s39_s28 = int_to_ptr.vmem [resolvable:$true] %s38_s28 }
   0x6   :  { %23 = dma.vmem_to_smem %s21_s23, 16, %s1150_s25, [#allocation6]  }
   0x7   :  { %s48_s1 = sshll.u32 %s1757_s4, 4  ;;  %s1151_s6 = smov [#allocation9]   ;;  %s49_s1 = int_to_ptr.hbm [resolvable:$true] %s48_s1 }
   0x8   :  { %41 = dma.vmem_to_smem %s39_s28, 16, %s1151_s6, [#allocation8]  }
   0x9   :  { %s1152_s7 = smov [#allocation10]   ;;  %s1153_s0 = smov 128  }
   0xa   :  { %s50_s8 = sshll.u32 %s1152_s7, 4  ;;  %s1154_s9 = smov 8   ;;  %s51_s8 = int_to_ptr.vmem [resolvable:$true] %s50_s8 }
   0xb   :  { %56 = dma.hbm_to_vmem [thread:$0]  %s49_s1, 256, %s51_s8, [#allocation4], %s1153_s0, %s1153_s0, %s1154_s9  }
   0xc   :  { %1141 = dma.done.wait [#allocation6], 16  }
   0xd   :  { %1142 = vsyncadd [#allocation6], 4294967280 }
   0xe   :  { %1143 = dma.done.wait [#allocation8], 32  }
   0xf   :  { %1144 = vsyncadd [#allocation8], 4294967264 }
  0x10   :  { %1145 = dma.done.wait [#allocation4], 256  }
  0x11   :  { %1146 = vsyncadd [#allocation4], 4294967040 }
  0x12   :  { %73 = sfence }
  0x13   :  { %s78_s2 = sld [smem:[#allocation3]]  ;;  %v1203_v0 = vld [vmem:[#allocation10] sm:$0xff]  ;;  %v1205_v1 = vld [vmem:[#allocation10 + $0x8] sm:$0xff]  ;;  %v77_v13 = vstv %s1756_s3 }
  0x14   :  { %s79_s4 = sld [smem:[#allocation7]] }
  0x15   :  { %s1201_s10 = sld [smem:[#allocation9]] }
  0x16   :  { %s901_s11 = sld [smem:[#allocation3 + $0x1]] }
  0x17   :  { %s902_s12 = sld [smem:[#allocation7 + $0x1]] }
  0x18   :  { %s1207_s13 = sld [smem:[#allocation9 + $0x1]] }
  0x19   :  { %v81_v2 = vstv %s78_s2  ;;  %s904_s14 = sld [smem:[#allocation3 + $0x2]] }
  0x1a   :  { %v82_v3 = vmul.f32 %v81_v2, %v1203_v0  ;;  %v83_v4 = vmul.f32 %v81_v2, %v1205_v1  ;;  %v84_v5 = vstv %s79_s4  ;;  %s1211_s15 = sld [smem:[#allocation7 + $0x2]] }
  0x1b   :  { %s1213_s16 = sld [smem:[#allocation9 + $0x2]]  ;;  %v89_v9 = vstv %s1201_s10 }
  0x1c   :  { %v85_v6 = vadd.f32 %v84_v5, %v82_v3  ;;  %v86_v7 = vadd.f32 %v84_v5, %v83_v4  ;;  %v97_v8 = vstv %s901_s11  ;;  %s1215_s17 = sld [smem:[#allocation3 + $0x3]] }
  0x1d   :  { %v98_v10 = vmul.f32 %v97_v8, %v1203_v0  ;;  %v99_v11 = vmul.f32 %v97_v8, %v1205_v1  ;;  %v100_v12 = vstv %s902_s12  ;;  %s1220_s18 = sld [smem:[#allocation7 + $0x3]] }
  0x1e   :  { %v87_v14 = vmax.f32 %v85_v6, 0.0  ;;  %v88_v15 = vmax.f32 %v86_v7, 0.0  ;;  %s1225_s21 = sld [smem:[#allocation9 + $0x3]]  ;;  %v105_v18 = vstv %s1207_s13 }
  0x1f   :  { %v101_v16 = vadd.f32 %v100_v12, %v98_v10  ;;  %v102_v17 = vadd.f32 %v100_v12, %v99_v11  ;;  %v113_v19 = vstv %s904_s14  ;;  %s1228_s22 = sld [smem:[#allocation3 + $0x4]] }
  0x20   :  { %v90_v20 = vmul.f32 %v89_v9, %v87_v14  ;;  %v91_v21 = vmul.f32 %v89_v9, %v88_v15  ;;  %v114_v22 = vmul.f32 %v113_v19, %v1203_v0  ;;  %v115_v23 = vmul.f32 %v113_v19, %v1205_v1  ;;  %s1232_s3 = sld [smem:[#allocation7 + $0x4]] }
  0x21   :  { %v103_v24 = vmax.f32 %v101_v16, 0.0  ;;  %v104_v25 = vmax.f32 %v102_v17, 0.0  ;;  %v116_v26 = vstv %s1211_s15  ;;  %v121_v27 = vstv %s1213_s16  ;;  %s1236_s23 = sld [smem:[#allocation9 + $0x4]] }
  0x22   :  { %v92_v28 = vadd.f32 %v90_v20, %v77_v13  ;;  %v93_v29 = vadd.f32 %v91_v21, %v77_v13  ;;  %v117_v30 = vadd.f32 %v116_v26, %v114_v22  ;;  %v118_v31 = vadd.f32 %v116_v26, %v115_v23  ;;  %s1238_s24 = sld [smem:[#allocation3 + $0x5]] }
  0x23   :  { %v106_v32 = vmul.f32 %v105_v18, %v103_v24  ;;  %v107_v33 = vmul.f32 %v105_v18, %v104_v25  ;;  %v129_v34 = vstv %s1215_s17  ;;  %v132_v35 = vstv %s1220_s18  ;;  %s1242_s25 = sld [smem:[#allocation7 + $0x5]] }
  0x24   :  { %v119_v36 = vmax.f32 %v117_v30, 0.0  ;;  %v120_v37 = vmax.f32 %v118_v31, 0.0  ;;  %v130_v38 = vmul.f32 %v129_v34, %v1203_v0  ;;  %v131_v39 = vmul.f32 %v129_v34, %v1205_v1  ;;  %s1246_s26 = sld [smem:[#allocation9 + $0x5]] }
  0x25   :  { %v108_v40 = vadd.f32 %v106_v32, %v92_v28  ;;  %v109_v41 = vadd.f32 %v107_v33, %v93_v29  ;;  %v137_v42 = vstv %s1225_s21  ;;  %v145_v43 = vstv %s1228_s22  ;;  %s1250_s27 = sld [smem:[#allocation3 + $0x6]] }
  0x26   :  { %v122_v44 = vmul.f32 %v121_v27, %v119_v36  ;;  %v123_v45 = vmul.f32 %v121_v27, %v120_v37  ;;  %v133_v46 = vadd.f32 %v132_v35, %v130_v38  ;;  %v134_v47 = vadd.f32 %v132_v35, %v131_v39  ;;  %s1252_s28 = sld [smem:[#allocation7 + $0x6]] }
  0x27   :  { %v146_v48 = vmul.f32 %v145_v43, %v1203_v0  ;;  %v147_v49 = vmul.f32 %v145_v43, %v1205_v1  ;;  %v148_v50 = vstv %s1232_s3  ;;  %v153_v51 = vstv %s1236_s23  ;;  %s1258_s29 = sld [smem:[#allocation9 + $0x6]] }
  0x28   :  { %v124_v52 = vadd.f32 %v122_v44, %v108_v40  ;;  %v125_v53 = vadd.f32 %v123_v45, %v109_v41  ;;  %v135_v54 = vmax.f32 %v133_v46, 0.0  ;;  %v136_v55 = vmax.f32 %v134_v47, 0.0  ;;  %s1260_s30 = sld [smem:[#allocation3 + $0x7]] }
  0x29   :  { %v149_v56 = vadd.f32 %v148_v50, %v146_v48  ;;  %v150_v57 = vadd.f32 %v148_v50, %v147_v49  ;;  %v161_v58 = vstv %s1238_s24  ;;  %v164_v59 = vstv %s1242_s25  ;;  %s1264_s1 = sld [smem:[#allocation7 + $0x7]] }
  0x2a   :  { %v138_v60 = vmul.f32 %v137_v42, %v135_v54  ;;  %v139_v61 = vmul.f32 %v137_v42, %v136_v55  ;;  %v162_v62 = vmul.f32 %v161_v58, %v1203_v0  ;;  %v163_v63 = vmul.f32 %v161_v58, %v1205_v1  ;;  %s1268_s6 = sld [smem:[#allocation9 + $0x7]] }
  0x2b   :  { %v151_v2 = vmax.f32 %v149_v56, 0.0  ;;  %v152_v3 = vmax.f32 %v150_v57, 0.0  ;;  %v169_v4 = vstv %s1246_s26  ;;  %v177_v5 = vstv %s1250_s27  ;;  %s1272_s7 = sld [smem:[#allocation3 + $0x8]] }
  0x2c   :  { %v140_v6 = vadd.f32 %v138_v60, %v124_v52  ;;  %v141_v7 = vadd.f32 %v139_v61, %v125_v53  ;;  %v165_v8 = vadd.f32 %v164_v59, %v162_v62  ;;  %v166_v9 = vadd.f32 %v164_v59, %v163_v63  ;;  %s1274_s8 = sld [smem:[#allocation7 + $0x8]] }
  0x2d   :  { %v154_v10 = vmul.f32 %v153_v51, %v151_v2  ;;  %v155_v11 = vmul.f32 %v153_v51, %v152_v3  ;;  %v178_v12 = vmul.f32 %v177_v5, %v1203_v0  ;;  %v179_v13 = vmul.f32 %v177_v5, %v1205_v1  ;;  %s1278_s2 = sld [smem:[#allocation9 + $0x8]] }
  0x2e   :  { %v167_v14 = vmax.f32 %v165_v8, 0.0  ;;  %v168_v15 = vmax.f32 %v166_v9, 0.0  ;;  %v180_v16 = vstv %s1252_s28  ;;  %v185_v17 = vstv %s1258_s29  ;;  %s1282_s4 = sld [smem:[#allocation3 + $0x9]] }
  0x2f   :  { %v156_v18 = vadd.f32 %v154_v10, %v140_v6  ;;  %v157_v19 = vadd.f32 %v155_v11, %v141_v7  ;;  %v181_v20 = vadd.f32 %v180_v16, %v178_v12  ;;  %v182_v21 = vadd.f32 %v180_v16, %v179_v13  ;;  %s1284_s10 = sld [smem:[#allocation7 + $0x9]] }
  0x30   :  { %v170_v22 = vmul.f32 %v169_v4, %v167_v14  ;;  %v171_v23 = vmul.f32 %v169_v4, %v168_v15  ;;  %v193_v24 = vstv %s1260_s30  ;;  %v196_v25 = vstv %s1264_s1  ;;  %s1288_s11 = sld [smem:[#allocation9 + $0x9]] }
  0x31   :  { %v183_v26 = vmax.f32 %v181_v20, 0.0  ;;  %v184_v27 = vmax.f32 %v182_v21, 0.0  ;;  %v194_v28 = vmul.f32 %v193_v24, %v1203_v0  ;;  %v195_v29 = vmul.f32 %v193_v24, %v1205_v1  ;;  %s1292_s12 = sld [smem:[#allocation3 + $0xa]] }
  0x32   :  { %v172_v30 = vadd.f32 %v170_v22, %v156_v18  ;;  %v173_v31 = vadd.f32 %v171_v23, %v157_v19  ;;  %v201_v32 = vstv %s1268_s6  ;;  %v209_v33 = vstv %s1272_s7  ;;  %s1296_s13 = sld [smem:[#allocation7 + $0xa]] }
  0x33   :  { %v186_v34 = vmul.f32 %v185_v17, %v183_v26  ;;  %v187_v35 = vmul.f32 %v185_v17, %v184_v27  ;;  %v197_v36 = vadd.f32 %v196_v25, %v194_v28  ;;  %v198_v37 = vadd.f32 %v196_v25, %v195_v29  ;;  %s1298_s14 = sld [smem:[#allocation9 + $0xa]] }
  0x34   :  { %v210_v38 = vmul.f32 %v209_v33, %v1203_v0  ;;  %v211_v39 = vmul.f32 %v209_v33, %v1205_v1  ;;  %v212_v40 = vstv %s1274_s8  ;;  %v217_v41 = vstv %s1278_s2  ;;  %s1304_s15 = sld [smem:[#allocation3 + $0xb]] }
  0x35   :  { %v188_v42 = vadd.f32 %v186_v34, %v172_v30  ;;  %v189_v43 = vadd.f32 %v187_v35, %v173_v31  ;;  %v199_v44 = vmax.f32 %v197_v36, 0.0  ;;  %v200_v45 = vmax.f32 %v198_v37, 0.0  ;;  %s1306_s16 = sld [smem:[#allocation7 + $0xb]] }
  0x36   :  { %v213_v46 = vadd.f32 %v212_v40, %v210_v38  ;;  %v214_v47 = vadd.f32 %v212_v40, %v211_v39  ;;  %v225_v48 = vstv %s1282_s4  ;;  %v228_v49 = vstv %s1284_s10  ;;  %s1310_s17 = sld [smem:[#allocation9 + $0xb]] }
  0x37   :  { %v202_v50 = vmul.f32 %v201_v32, %v199_v44  ;;  %v203_v51 = vmul.f32 %v201_v32, %v200_v45  ;;  %v226_v52 = vmul.f32 %v225_v48, %v1203_v0  ;;  %v227_v53 = vmul.f32 %v225_v48, %v1205_v1  ;;  %s1314_s18 = sld [smem:[#allocation3 + $0xc]] }
  0x38   :  { %v215_v54 = vmax.f32 %v213_v46, 0.0  ;;  %v216_v55 = vmax.f32 %v214_v47, 0.0  ;;  %v233_v56 = vstv %s1288_s11  ;;  %v241_v57 = vstv %s1292_s12  ;;  %s1318_s19 = sld [smem:[#allocation7 + $0xc]] }
  0x39   :  { %v204_v58 = vadd.f32 %v202_v50, %v188_v42  ;;  %v205_v59 = vadd.f32 %v203_v51, %v189_v43  ;;  %v229_v60 = vadd.f32 %v228_v49, %v226_v52  ;;  %v230_v61 = vadd.f32 %v228_v49, %v227_v53  ;;  %s1320_s20 = sld [smem:[#allocation9 + $0xc]] }
  0x3a   :  { %v218_v62 = vmul.f32 %v217_v41, %v215_v54  ;;  %v219_v63 = vmul.f32 %v217_v41, %v216_v55  ;;  %v242_v2 = vmul.f32 %v241_v57, %v1203_v0  ;;  %v243_v3 = vmul.f32 %v241_v57, %v1205_v1  ;;  %s1324_s21 = sld [smem:[#allocation3 + $0xd]] }
  0x3b   :  { %v231_v4 = vmax.f32 %v229_v60, 0.0  ;;  %v232_v5 = vmax.f32 %v230_v61, 0.0  ;;  %v244_v6 = vstv %s1296_s13  ;;  %v249_v7 = vstv %s1298_s14  ;;  %s1328_s22 = sld [smem:[#allocation7 + $0xd]] }
  0x3c   :  { %v220_v8 = vadd.f32 %v218_v62, %v204_v58  ;;  %v221_v9 = vadd.f32 %v219_v63, %v205_v59  ;;  %v245_v10 = vadd.f32 %v244_v6, %v242_v2  ;;  %v246_v11 = vadd.f32 %v244_v6, %v243_v3  ;;  %s1330_s3 = sld [smem:[#allocation9 + $0xd]] }
  0x3d   :  { %v234_v12 = vmul.f32 %v233_v56, %v231_v4  ;;  %v235_v13 = vmul.f32 %v233_v56, %v232_v5  ;;  %v257_v14 = vstv %s1304_s15  ;;  %v260_v15 = vstv %s1306_s16  ;;  %s1334_s23 = sld [smem:[#allocation3 + $0xe]] }
  0x3e   :  { %v247_v16 = vmax.f32 %v245_v10, 0.0  ;;  %v248_v17 = vmax.f32 %v246_v11, 0.0  ;;  %v258_v18 = vmul.f32 %v257_v14, %v1203_v0  ;;  %v259_v19 = vmul.f32 %v257_v14, %v1205_v1  ;;  %s1340_s24 = sld [smem:[#allocation7 + $0xe]] }
  0x3f   :  { %v236_v20 = vadd.f32 %v234_v12, %v220_v8  ;;  %v237_v21 = vadd.f32 %v235_v13, %v221_v9  ;;  %v265_v22 = vstv %s1310_s17  ;;  %v273_v23 = vstv %s1314_s18  ;;  %s1342_s25 = sld [smem:[#allocation9 + $0xe]] }
  0x40   :  { %v250_v24 = vmul.f32 %v249_v7, %v247_v16  ;;  %v251_v25 = vmul.f32 %v249_v7, %v248_v17  ;;  %v261_v26 = vadd.f32 %v260_v15, %v258_v18  ;;  %v262_v27 = vadd.f32 %v260_v15, %v259_v19  ;;  %s1348_s26 = sld [smem:[#allocation3 + $0xf]] }
  0x41   :  { %v274_v28 = vmul.f32 %v273_v23, %v1203_v0  ;;  %v275_v29 = vmul.f32 %v273_v23, %v1205_v1  ;;  %v276_v30 = vstv %s1318_s19  ;;  %v281_v31 = vstv %s1320_s20  ;;  %s1350_s27 = sld [smem:[#allocation7 + $0xf]] }
  0x42   :  { %v252_v32 = vadd.f32 %v250_v24, %v236_v20  ;;  %v253_v33 = vadd.f32 %v251_v25, %v237_v21  ;;  %v263_v34 = vmax.f32 %v261_v26, 0.0  ;;  %v264_v35 = vmax.f32 %v262_v27, 0.0  ;;  %s1354_s28 = sld [smem:[#allocation9 + $0xf]] }
  0x43   :  { %v277_v36 = vadd.f32 %v276_v30, %v274_v28  ;;  %v278_v37 = vadd.f32 %v276_v30, %v275_v29  ;;  %v289_v38 = vstv %s1324_s21  ;;  %v292_v39 = vstv %s1328_s22  ;;  %s1358_s29 = sld [smem:[#allocation3 + $0x10]] }
  0x44   :  { %v266_v40 = vmul.f32 %v265_v22, %v263_v34  ;;  %v267_v41 = vmul.f32 %v265_v22, %v264_v35  ;;  %v290_v42 = vmul.f32 %v289_v38, %v1203_v0  ;;  %v291_v43 = vmul.f32 %v289_v38, %v1205_v1  ;;  %s1362_s30 = sld [smem:[#allocation7 + $0x10]] }
  0x45   :  { %v279_v44 = vmax.f32 %v277_v36, 0.0  ;;  %v280_v45 = vmax.f32 %v278_v37, 0.0  ;;  %v297_v46 = vstv %s1330_s3  ;;  %v305_v47 = vstv %s1334_s23  ;;  %s1364_s1 = sld [smem:[#allocation9 + $0x10]] }
  0x46   :  { %v268_v48 = vadd.f32 %v266_v40, %v252_v32  ;;  %v269_v49 = vadd.f32 %v267_v41, %v253_v33  ;;  %v293_v50 = vadd.f32 %v292_v39, %v290_v42  ;;  %v294_v51 = vadd.f32 %v292_v39, %v291_v43  ;;  %s1368_s6 = sld [smem:[#allocation3 + $0x11]] }
  0x47   :  { %v282_v52 = vmul.f32 %v281_v31, %v279_v44  ;;  %v283_v53 = vmul.f32 %v281_v31, %v280_v45  ;;  %v306_v54 = vmul.f32 %v305_v47, %v1203_v0  ;;  %v307_v55 = vmul.f32 %v305_v47, %v1205_v1  ;;  %s1372_s7 = sld [smem:[#allocation7 + $0x11]] }
  0x48   :  { %v295_v56 = vmax.f32 %v293_v50, 0.0  ;;  %v296_v57 = vmax.f32 %v294_v51, 0.0  ;;  %v308_v58 = vstv %s1340_s24  ;;  %v313_v59 = vstv %s1342_s25  ;;  %s1374_s8 = sld [smem:[#allocation9 + $0x11]] }
  0x49   :  { %v284_v60 = vadd.f32 %v282_v52, %v268_v48  ;;  %v285_v61 = vadd.f32 %v283_v53, %v269_v49  ;;  %v309_v62 = vadd.f32 %v308_v58, %v306_v54  ;;  %v310_v63 = vadd.f32 %v308_v58, %v307_v55  ;;  %s1378_s2 = sld [smem:[#allocation3 + $0x12]] }
  0x4a   :  { %v298_v2 = vmul.f32 %v297_v46, %v295_v56  ;;  %v299_v3 = vmul.f32 %v297_v46, %v296_v57  ;;  %v321_v4 = vstv %s1348_s26  ;;  %v324_v5 = vstv %s1350_s27  ;;  %s1384_s4 = sld [smem:[#allocation7 + $0x12]] }
  0x4b   :  { %v311_v6 = vmax.f32 %v309_v62, 0.0  ;;  %v312_v7 = vmax.f32 %v310_v63, 0.0  ;;  %v322_v8 = vmul.f32 %v321_v4, %v1203_v0  ;;  %v323_v9 = vmul.f32 %v321_v4, %v1205_v1  ;;  %s1386_s10 = sld [smem:[#allocation9 + $0x12]] }
  0x4c   :  { %v300_v10 = vadd.f32 %v298_v2, %v284_v60  ;;  %v301_v11 = vadd.f32 %v299_v3, %v285_v61  ;;  %v329_v12 = vstv %s1354_s28  ;;  %v337_v13 = vstv %s1358_s29  ;;  %s1392_s11 = sld [smem:[#allocation3 + $0x13]] }
  0x4d   :  { %v314_v14 = vmul.f32 %v313_v59, %v311_v6  ;;  %v315_v15 = vmul.f32 %v313_v59, %v312_v7  ;;  %v325_v16 = vadd.f32 %v324_v5, %v322_v8  ;;  %v326_v17 = vadd.f32 %v324_v5, %v323_v9  ;;  %s1394_s12 = sld [smem:[#allocation7 + $0x13]] }
  0x4e   :  { %v338_v18 = vmul.f32 %v337_v13, %v1203_v0  ;;  %v339_v19 = vmul.f32 %v337_v13, %v1205_v1  ;;  %v340_v20 = vstv %s1362_s30  ;;  %v345_v21 = vstv %s1364_s1  ;;  %s1398_s13 = sld [smem:[#allocation9 + $0x13]] }
  0x4f   :  { %v316_v22 = vadd.f32 %v314_v14, %v300_v10  ;;  %v317_v23 = vadd.f32 %v315_v15, %v301_v11  ;;  %v327_v24 = vmax.f32 %v325_v16, 0.0  ;;  %v328_v25 = vmax.f32 %v326_v17, 0.0  ;;  %s1402_s14 = sld [smem:[#allocation3 + $0x14]] }
  0x50   :  { %v341_v26 = vadd.f32 %v340_v20, %v338_v18  ;;  %v342_v27 = vadd.f32 %v340_v20, %v339_v19  ;;  %v353_v28 = vstv %s1368_s6  ;;  %v356_v29 = vstv %s1372_s7  ;;  %s1406_s15 = sld [smem:[#allocation7 + $0x14]] }
  0x51   :  { %v330_v30 = vmul.f32 %v329_v12, %v327_v24  ;;  %v331_v31 = vmul.f32 %v329_v12, %v328_v25  ;;  %v354_v32 = vmul.f32 %v353_v28, %v1203_v0  ;;  %v355_v33 = vmul.f32 %v353_v28, %v1205_v1  ;;  %s1408_s16 = sld [smem:[#allocation9 + $0x14]] }
  0x52   :  { %v343_v34 = vmax.f32 %v341_v26, 0.0  ;;  %v344_v35 = vmax.f32 %v342_v27, 0.0  ;;  %v361_v36 = vstv %s1374_s8  ;;  %v369_v37 = vstv %s1378_s2  ;;  %s1412_s17 = sld [smem:[#allocation3 + $0x15]] }
  0x53   :  { %v332_v38 = vadd.f32 %v330_v30, %v316_v22  ;;  %v333_v39 = vadd.f32 %v331_v31, %v317_v23  ;;  %v357_v40 = vadd.f32 %v356_v29, %v354_v32  ;;  %v358_v41 = vadd.f32 %v356_v29, %v355_v33  ;;  %s1416_s18 = sld [smem:[#allocation7 + $0x15]] }
  0x54   :  { %v346_v42 = vmul.f32 %v345_v21, %v343_v34  ;;  %v347_v43 = vmul.f32 %v345_v21, %v344_v35  ;;  %v370_v44 = vmul.f32 %v369_v37, %v1203_v0  ;;  %v371_v45 = vmul.f32 %v369_v37, %v1205_v1  ;;  %s1418_s19 = sld [smem:[#allocation9 + $0x15]] }
  0x55   :  { %v359_v46 = vmax.f32 %v357_v40, 0.0  ;;  %v360_v47 = vmax.f32 %v358_v41, 0.0  ;;  %v372_v48 = vstv %s1384_s4  ;;  %v377_v49 = vstv %s1386_s10  ;;  %s1422_s20 = sld [smem:[#allocation3 + $0x16]] }
  0x56   :  { %v348_v50 = vadd.f32 %v346_v42, %v332_v38  ;;  %v349_v51 = vadd.f32 %v347_v43, %v333_v39  ;;  %v373_v52 = vadd.f32 %v372_v48, %v370_v44  ;;  %v374_v53 = vadd.f32 %v372_v48, %v371_v45  ;;  %s1428_s21 = sld [smem:[#allocation7 + $0x16]] }
  0x57   :  { %v362_v54 = vmul.f32 %v361_v36, %v359_v46  ;;  %v363_v55 = vmul.f32 %v361_v36, %v360_v47  ;;  %v385_v56 = vstv %s1392_s11  ;;  %v388_v57 = vstv %s1394_s12  ;;  %s1430_s22 = sld [smem:[#allocation9 + $0x16]] }
  0x58   :  { %v375_v58 = vmax.f32 %v373_v52, 0.0  ;;  %v376_v59 = vmax.f32 %v374_v53, 0.0  ;;  %v386_v60 = vmul.f32 %v385_v56, %v1203_v0  ;;  %v387_v61 = vmul.f32 %v385_v56, %v1205_v1  ;;  %s1436_s3 = sld [smem:[#allocation3 + $0x17]] }
  0x59   :  { %v364_v62 = vadd.f32 %v362_v54, %v348_v50  ;;  %v365_v63 = vadd.f32 %v363_v55, %v349_v51  ;;  %v393_v2 = vstv %s1398_s13  ;;  %v401_v3 = vstv %s1402_s14  ;;  %s1438_s23 = sld [smem:[#allocation7 + $0x17]] }
  0x5a   :  { %v378_v4 = vmul.f32 %v377_v49, %v375_v58  ;;  %v379_v5 = vmul.f32 %v377_v49, %v376_v59  ;;  %v389_v6 = vadd.f32 %v388_v57, %v386_v60  ;;  %v390_v7 = vadd.f32 %v388_v57, %v387_v61  ;;  %s1442_s24 = sld [smem:[#allocation9 + $0x17]] }
  0x5b   :  { %v402_v8 = vmul.f32 %v401_v3, %v1203_v0  ;;  %v403_v9 = vmul.f32 %v401_v3, %v1205_v1  ;;  %v404_v10 = vstv %s1406_s15  ;;  %v409_v11 = vstv %s1408_s16  ;;  %s1446_s25 = sld [smem:[#allocation3 + $0x18]] }
  0x5c   :  { %v380_v12 = vadd.f32 %v378_v4, %v364_v62  ;;  %v381_v13 = vadd.f32 %v379_v5, %v365_v63  ;;  %v391_v14 = vmax.f32 %v389_v6, 0.0  ;;  %v392_v15 = vmax.f32 %v390_v7, 0.0  ;;  %s1450_s26 = sld [smem:[#allocation7 + $0x18]] }
  0x5d   :  { %v405_v16 = vadd.f32 %v404_v10, %v402_v8  ;;  %v406_v17 = vadd.f32 %v404_v10, %v403_v9  ;;  %v417_v18 = vstv %s1412_s17  ;;  %v420_v19 = vstv %s1416_s18  ;;  %s1452_s27 = sld [smem:[#allocation9 + $0x18]] }
  0x5e   :  { %v394_v20 = vmul.f32 %v393_v2, %v391_v14  ;;  %v395_v21 = vmul.f32 %v393_v2, %v392_v15  ;;  %v418_v22 = vmul.f32 %v417_v18, %v1203_v0  ;;  %v419_v23 = vmul.f32 %v417_v18, %v1205_v1  ;;  %s1456_s28 = sld [smem:[#allocation3 + $0x19]] }
  0x5f   :  { %v407_v24 = vmax.f32 %v405_v16, 0.0  ;;  %v408_v25 = vmax.f32 %v406_v17, 0.0  ;;  %v425_v26 = vstv %s1418_s19  ;;  %v433_v27 = vstv %s1422_s20  ;;  %s1460_s29 = sld [smem:[#allocation7 + $0x19]] }
  0x60   :  { %v396_v28 = vadd.f32 %v394_v20, %v380_v12  ;;  %v397_v29 = vadd.f32 %v395_v21, %v381_v13  ;;  %v421_v30 = vadd.f32 %v420_v19, %v418_v22  ;;  %v422_v31 = vadd.f32 %v420_v19, %v419_v23  ;;  %s1462_s30 = sld [smem:[#allocation9 + $0x19]] }
  0x61   :  { %v410_v32 = vmul.f32 %v409_v11, %v407_v24  ;;  %v411_v33 = vmul.f32 %v409_v11, %v408_v25  ;;  %v434_v34 = vmul.f32 %v433_v27, %v1203_v0  ;;  %v435_v35 = vmul.f32 %v433_v27, %v1205_v1  ;;  %s1466_s1 = sld [smem:[#allocation3 + $0x1a]] }
  0x62   :  { %v423_v36 = vmax.f32 %v421_v30, 0.0  ;;  %v424_v37 = vmax.f32 %v422_v31, 0.0  ;;  %v436_v38 = vstv %s1428_s21  ;;  %v441_v39 = vstv %s1430_s22  ;;  %s1472_s6 = sld [smem:[#allocation7 + $0x1a]] }
  0x63   :  { %v412_v40 = vadd.f32 %v410_v32, %v396_v28  ;;  %v413_v41 = vadd.f32 %v411_v33, %v397_v29  ;;  %v437_v42 = vadd.f32 %v436_v38, %v434_v34  ;;  %v438_v43 = vadd.f32 %v436_v38, %v435_v35  ;;  %s1474_s7 = sld [smem:[#allocation9 + $0x1a]] }
  0x64   :  { %v426_v44 = vmul.f32 %v425_v26, %v423_v36  ;;  %v427_v45 = vmul.f32 %v425_v26, %v424_v37  ;;  %v449_v46 = vstv %s1436_s3  ;;  %v452_v47 = vstv %s1438_s23  ;;  %s1480_s8 = sld [smem:[#allocation3 + $0x1b]] }
  0x65   :  { %v439_v48 = vmax.f32 %v437_v42, 0.0  ;;  %v440_v49 = vmax.f32 %v438_v43, 0.0  ;;  %v450_v50 = vmul.f32 %v449_v46, %v1203_v0  ;;  %v451_v51 = vmul.f32 %v449_v46, %v1205_v1  ;;  %s1482_s2 = sld [smem:[#allocation7 + $0x1b]] }
  0x66   :  { %v428_v52 = vadd.f32 %v426_v44, %v412_v40  ;;  %v429_v53 = vadd.f32 %v427_v45, %v413_v41  ;;  %v457_v54 = vstv %s1442_s24  ;;  %v465_v55 = vstv %s1446_s25  ;;  %s1486_s4 = sld [smem:[#allocation9 + $0x1b]] }
  0x67   :  { %v442_v56 = vmul.f32 %v441_v39, %v439_v48  ;;  %v443_v57 = vmul.f32 %v441_v39, %v440_v49  ;;  %v453_v58 = vadd.f32 %v452_v47, %v450_v50  ;;  %v454_v59 = vadd.f32 %v452_v47, %v451_v51  ;;  %s1490_s10 = sld [smem:[#allocation3 + $0x1c]] }
  0x68   :  { %v466_v60 = vmul.f32 %v465_v55, %v1203_v0  ;;  %v467_v61 = vmul.f32 %v465_v55, %v1205_v1  ;;  %v468_v62 = vstv %s1450_s26  ;;  %v473_v63 = vstv %s1452_s27  ;;  %s1494_s11 = sld [smem:[#allocation7 + $0x1c]] }
  0x69   :  { %v444_v2 = vadd.f32 %v442_v56, %v428_v52  ;;  %v445_v3 = vadd.f32 %v443_v57, %v429_v53  ;;  %v455_v4 = vmax.f32 %v453_v58, 0.0  ;;  %v456_v5 = vmax.f32 %v454_v59, 0.0  ;;  %s1496_s12 = sld [smem:[#allocation9 + $0x1c]] }
  0x6a   :  { %v469_v6 = vadd.f32 %v468_v62, %v466_v60  ;;  %v470_v7 = vadd.f32 %v468_v62, %v467_v61  ;;  %v481_v8 = vstv %s1456_s28  ;;  %v484_v9 = vstv %s1460_s29  ;;  %s1500_s13 = sld [smem:[#allocation3 + $0x1d]] }
  0x6b   :  { %v458_v10 = vmul.f32 %v457_v54, %v455_v4  ;;  %v459_v11 = vmul.f32 %v457_v54, %v456_v5  ;;  %v482_v12 = vmul.f32 %v481_v8, %v1203_v0  ;;  %v483_v13 = vmul.f32 %v481_v8, %v1205_v1  ;;  %s1504_s14 = sld [smem:[#allocation7 + $0x1d]] }
  0x6c   :  { %v471_v14 = vmax.f32 %v469_v6, 0.0  ;;  %v472_v15 = vmax.f32 %v470_v7, 0.0  ;;  %v489_v16 = vstv %s1462_s30  ;;  %v497_v17 = vstv %s1466_s1  ;;  %s1506_s15 = sld [smem:[#allocation9 + $0x1d]] }
  0x6d   :  { %v460_v18 = vadd.f32 %v458_v10, %v444_v2  ;;  %v461_v19 = vadd.f32 %v459_v11, %v445_v3  ;;  %v485_v20 = vadd.f32 %v484_v9, %v482_v12  ;;  %v486_v21 = vadd.f32 %v484_v9, %v483_v13  ;;  %s1510_s16 = sld [smem:[#allocation3 + $0x1e]] }
  0x6e   :  { %v474_v22 = vmul.f32 %v473_v63, %v471_v14  ;;  %v475_v23 = vmul.f32 %v473_v63, %v472_v15  ;;  %v498_v24 = vmul.f32 %v497_v17, %v1203_v0  ;;  %v499_v25 = vmul.f32 %v497_v17, %v1205_v1  ;;  %s1516_s17 = sld [smem:[#allocation7 + $0x1e]] }
  0x6f   :  { %v487_v26 = vmax.f32 %v485_v20, 0.0  ;;  %v488_v27 = vmax.f32 %v486_v21, 0.0  ;;  %v500_v28 = vstv %s1472_s6  ;;  %v505_v29 = vstv %s1474_s7  ;;  %s1518_s18 = sld [smem:[#allocation9 + $0x1e]] }
  0x70   :  { %v476_v30 = vadd.f32 %v474_v22, %v460_v18  ;;  %v477_v31 = vadd.f32 %v475_v23, %v461_v19  ;;  %v501_v32 = vadd.f32 %v500_v28, %v498_v24  ;;  %v502_v33 = vadd.f32 %v500_v28, %v499_v25  ;;  %s1524_s19 = sld [smem:[#allocation3 + $0x1f]] }
  0x71   :  { %v490_v34 = vmul.f32 %v489_v16, %v487_v26  ;;  %v491_v35 = vmul.f32 %v489_v16, %v488_v27  ;;  %v513_v36 = vstv %s1480_s8  ;;  %v516_v37 = vstv %s1482_s2  ;;  %s1526_s20 = sld [smem:[#allocation7 + $0x1f]] }
  0x72   :  { %v503_v38 = vmax.f32 %v501_v32, 0.0  ;;  %v504_v39 = vmax.f32 %v502_v33, 0.0  ;;  %v514_v40 = vmul.f32 %v513_v36, %v1203_v0  ;;  %v515_v41 = vmul.f32 %v513_v36, %v1205_v1  ;;  %s1530_s21 = sld [smem:[#allocation9 + $0x1f]] }
  0x73   :  { %v492_v42 = vadd.f32 %v490_v34, %v476_v30  ;;  %v493_v43 = vadd.f32 %v491_v35, %v477_v31  ;;  %v521_v44 = vstv %s1486_s4  ;;  %v529_v45 = vstv %s1490_s10  ;;  %s1534_s22 = sld [smem:[#allocation3 + $0x20]] }
  0x74   :  { %v506_v46 = vmul.f32 %v505_v29, %v503_v38  ;;  %v507_v47 = vmul.f32 %v505_v29, %v504_v39  ;;  %v517_v48 = vadd.f32 %v516_v37, %v514_v40  ;;  %v518_v49 = vadd.f32 %v516_v37, %v515_v41  ;;  %s1538_s3 = sld [smem:[#allocation7 + $0x20]]  ;;  %v1564_v40 = vld [vmem:[#allocation10] sm:$0xff] }
  0x75   :  { %v530_v50 = vmul.f32 %v529_v45, %v1203_v0  ;;  %v531_v51 = vmul.f32 %v529_v45, %v1205_v1  ;;  %v532_v52 = vstv %s1494_s11  ;;  %v537_v53 = vstv %s1496_s12  ;;  %s1540_s23 = sld [smem:[#allocation9 + $0x20]] }
  0x76   :  { %v508_v54 = vadd.f32 %v506_v46, %v492_v42  ;;  %v509_v55 = vadd.f32 %v507_v47, %v493_v43  ;;  %v519_v56 = vmax.f32 %v517_v48, 0.0  ;;  %v520_v57 = vmax.f32 %v518_v49, 0.0  ;;  %s1544_s24 = sld [smem:[#allocation3 + $0x21]] }
  0x77   :  { %v533_v58 = vadd.f32 %v532_v52, %v530_v50  ;;  %v534_v59 = vadd.f32 %v532_v52, %v531_v51  ;;  %v545_v60 = vstv %s1500_s13  ;;  %v548_v61 = vstv %s1504_s14  ;;  %s1548_s25 = sld [smem:[#allocation7 + $0x21]] }
  0x78   :  { %v522_v62 = vmul.f32 %v521_v44, %v519_v56  ;;  %v523_v63 = vmul.f32 %v521_v44, %v520_v57  ;;  %v546_v2 = vmul.f32 %v545_v60, %v1203_v0  ;;  %v547_v3 = vmul.f32 %v545_v60, %v1205_v1  ;;  %s1550_s26 = sld [smem:[#allocation9 + $0x21]] }
  0x79   :  { %v535_v4 = vmax.f32 %v533_v58, 0.0  ;;  %v536_v5 = vmax.f32 %v534_v59, 0.0  ;;  %v553_v6 = vstv %s1506_s15  ;;  %v561_v7 = vstv %s1510_s16  ;;  %s1554_s27 = sld [smem:[#allocation3 + $0x22]] }
  0x7a   :  { %v524_v8 = vadd.f32 %v522_v62, %v508_v54  ;;  %v525_v9 = vadd.f32 %v523_v63, %v509_v55  ;;  %v549_v10 = vadd.f32 %v548_v61, %v546_v2  ;;  %v550_v11 = vadd.f32 %v548_v61, %v547_v3  ;;  %s1560_s28 = sld [smem:[#allocation7 + $0x22]] }
  0x7b   :  { %v538_v12 = vmul.f32 %v537_v53, %v535_v4  ;;  %v539_v13 = vmul.f32 %v537_v53, %v536_v5  ;;  %v562_v14 = vmul.f32 %v561_v7, %v1203_v0  ;;  %v563_v15 = vmul.f32 %v561_v7, %v1205_v1  ;;  %s1562_s29 = sld [smem:[#allocation9 + $0x22]] }
  0x7c   :  { %v551_v16 = vmax.f32 %v549_v10, 0.0  ;;  %v552_v17 = vmax.f32 %v550_v11, 0.0  ;;  %v564_v18 = vstv %s1516_s17  ;;  %v569_v19 = vstv %s1518_s18  ;;  %s1572_s30 = sld [smem:[#allocation3 + $0x23]] }
  0x7d   :  { %v540_v20 = vadd.f32 %v538_v12, %v524_v8  ;;  %v541_v21 = vadd.f32 %v539_v13, %v525_v9  ;;  %v565_v22 = vadd.f32 %v564_v18, %v562_v14  ;;  %v566_v23 = vadd.f32 %v564_v18, %v563_v15  ;;  %s1574_s1 = sld [smem:[#allocation7 + $0x23]] }
  0x7e   :  { %v554_v24 = vmul.f32 %v553_v6, %v551_v16  ;;  %v555_v25 = vmul.f32 %v553_v6, %v552_v17  ;;  %v577_v26 = vstv %s1524_s19  ;;  %v580_v27 = vstv %s1526_s20  ;;  %s1578_s6 = sld [smem:[#allocation9 + $0x23]] }
  0x7f   :  { %v567_v28 = vmax.f32 %v565_v22, 0.0  ;;  %v568_v29 = vmax.f32 %v566_v23, 0.0  ;;  %v578_v30 = vmul.f32 %v577_v26, %v1203_v0  ;;  %v579_v31 = vmul.f32 %v577_v26, %v1205_v1  ;;  %v1567_v1 = vld [vmem:[#allocation10 + $0x8] sm:$0xff]  ;;  %s1582_s7 = sld [smem:[#allocation3 + $0x24]] }
  0x80   :  { %v556_v32 = vadd.f32 %v554_v24, %v540_v20  ;;  %v557_v33 = vadd.f32 %v555_v25, %v541_v21  ;;  %v585_v34 = vstv %s1530_s21  ;;  %v593_v35 = vstv %s1534_s22  ;;  %s1586_s8 = sld [smem:[#allocation7 + $0x24]] }
  0x81   :  { %v570_v36 = vmul.f32 %v569_v19, %v567_v28  ;;  %v571_v37 = vmul.f32 %v569_v19, %v568_v29  ;;  %v581_v38 = vadd.f32 %v580_v27, %v578_v30  ;;  %v582_v39 = vadd.f32 %v580_v27, %v579_v31  ;;  %s1588_s2 = sld [smem:[#allocation9 + $0x24]] }
  0x82   :  { %v594_v0 = vmul.f32 %v1564_v40, %v593_v35  ;;  %v595_v41 = vmul.f32 %v1567_v1, %v593_v35  ;;  %v596_v42 = vstv %s1538_s3  ;;  %v601_v43 = vstv %s1540_s23  ;;  %s1592_s4 = sld [smem:[#allocation3 + $0x25]] }
  0x83   :  { %v572_v44 = vadd.f32 %v570_v36, %v556_v32  ;;  %v573_v45 = vadd.f32 %v571_v37, %v557_v33  ;;  %v583_v46 = vmax.f32 %v581_v38, 0.0  ;;  %v584_v47 = vmax.f32 %v582_v39, 0.0  ;;  %s1596_s10 = sld [smem:[#allocation7 + $0x25]] }
  0x84   :  { %v597_v48 = vadd.f32 %v596_v42, %v594_v0  ;;  %v598_v49 = vadd.f32 %v596_v42, %v595_v41  ;;  %v609_v50 = vstv %s1544_s24  ;;  %v612_v51 = vstv %s1548_s25  ;;  %s1598_s11 = sld [smem:[#allocation9 + $0x25]] }
  0x85   :  { %v586_v52 = vmul.f32 %v585_v34, %v583_v46  ;;  %v587_v53 = vmul.f32 %v585_v34, %v584_v47  ;;  %v610_v54 = vmul.f32 %v1564_v40, %v609_v50  ;;  %v611_v55 = vmul.f32 %v1567_v1, %v609_v50  ;;  %s1602_s12 = sld [smem:[#allocation3 + $0x26]] }
  0x86   :  { %v599_v56 = vmax.f32 %v597_v48, 0.0  ;;  %v600_v57 = vmax.f32 %v598_v49, 0.0  ;;  %v617_v58 = vstv %s1550_s26  ;;  %v625_v59 = vstv %s1554_s27  ;;  %s1608_s13 = sld [smem:[#allocation7 + $0x26]] }
  0x87   :  { %v588_v60 = vadd.f32 %v586_v52, %v572_v44  ;;  %v589_v61 = vadd.f32 %v587_v53, %v573_v45  ;;  %v613_v62 = vadd.f32 %v612_v51, %v610_v54  ;;  %v614_v63 = vadd.f32 %v612_v51, %v611_v55  ;;  %s1610_s14 = sld [smem:[#allocation9 + $0x26]] }
  0x88   :  { %v602_v2 = vmul.f32 %v601_v43, %v599_v56  ;;  %v603_v3 = vmul.f32 %v601_v43, %v600_v57  ;;  %v626_v4 = vmul.f32 %v1564_v40, %v625_v59  ;;  %v627_v5 = vmul.f32 %v1567_v1, %v625_v59  ;;  %s1616_s15 = sld [smem:[#allocation3 + $0x27]] }
  0x89   :  { %v615_v6 = vmax.f32 %v613_v62, 0.0  ;;  %v616_v7 = vmax.f32 %v614_v63, 0.0  ;;  %v628_v8 = vstv %s1560_s28  ;;  %v633_v9 = vstv %s1562_s29  ;;  %s1618_s16 = sld [smem:[#allocation7 + $0x27]] }
  0x8a   :  { %v604_v10 = vadd.f32 %v602_v2, %v588_v60  ;;  %v605_v11 = vadd.f32 %v603_v3, %v589_v61  ;;  %v629_v12 = vadd.f32 %v628_v8, %v626_v4  ;;  %v630_v13 = vadd.f32 %v628_v8, %v627_v5  ;;  %s1622_s17 = sld [smem:[#allocation9 + $0x27]] }
  0x8b   :  { %v618_v14 = vmul.f32 %v617_v58, %v615_v6  ;;  %v619_v15 = vmul.f32 %v617_v58, %v616_v7  ;;  %v641_v16 = vstv %s1572_s30  ;;  %v644_v17 = vstv %s1574_s1  ;;  %s1626_s18 = sld [smem:[#allocation3 + $0x28]] }
  0x8c   :  { %v631_v18 = vmax.f32 %v629_v12, 0.0  ;;  %v632_v19 = vmax.f32 %v630_v13, 0.0  ;;  %v642_v20 = vmul.f32 %v1564_v40, %v641_v16  ;;  %v643_v21 = vmul.f32 %v1567_v1, %v641_v16  ;;  %s1630_s19 = sld [smem:[#allocation7 + $0x28]] }
  0x8d   :  { %v620_v22 = vadd.f32 %v618_v14, %v604_v10  ;;  %v621_v23 = vadd.f32 %v619_v15, %v605_v11  ;;  %v649_v24 = vstv %s1578_s6  ;;  %v657_v25 = vstv %s1582_s7  ;;  %s1632_s20 = sld [smem:[#allocation9 + $0x28]] }
  0x8e   :  { %v634_v26 = vmul.f32 %v633_v9, %v631_v18  ;;  %v635_v27 = vmul.f32 %v633_v9, %v632_v19  ;;  %v645_v28 = vadd.f32 %v644_v17, %v642_v20  ;;  %v646_v29 = vadd.f32 %v644_v17, %v643_v21  ;;  %s1636_s21 = sld [smem:[#allocation3 + $0x29]] }
  0x8f   :  { %v658_v30 = vmul.f32 %v1564_v40, %v657_v25  ;;  %v659_v31 = vmul.f32 %v1567_v1, %v657_v25  ;;  %v660_v32 = vstv %s1586_s8  ;;  %v665_v33 = vstv %s1588_s2  ;;  %s1640_s22 = sld [smem:[#allocation7 + $0x29]] }
  0x90   :  { %v636_v34 = vadd.f32 %v634_v26, %v620_v22  ;;  %v637_v35 = vadd.f32 %v635_v27, %v621_v23  ;;  %v647_v36 = vmax.f32 %v645_v28, 0.0  ;;  %v648_v37 = vmax.f32 %v646_v29, 0.0  ;;  %s1642_s3 = sld [smem:[#allocation9 + $0x29]] }
  0x91   :  { %v661_v38 = vadd.f32 %v660_v32, %v658_v30  ;;  %v662_v39 = vadd.f32 %v660_v32, %v659_v31  ;;  %v673_v0 = vstv %s1592_s4  ;;  %v676_v41 = vstv %s1596_s10  ;;  %s1646_s23 = sld [smem:[#allocation3 + $0x2a]] }
  0x92   :  { %v650_v42 = vmul.f32 %v649_v24, %v647_v36  ;;  %v651_v43 = vmul.f32 %v649_v24, %v648_v37  ;;  %v674_v44 = vmul.f32 %v1564_v40, %v673_v0  ;;  %v675_v45 = vmul.f32 %v1567_v1, %v673_v0  ;;  %s1652_s24 = sld [smem:[#allocation7 + $0x2a]] }
  0x93   :  { %v663_v46 = vmax.f32 %v661_v38, 0.0  ;;  %v664_v47 = vmax.f32 %v662_v39, 0.0  ;;  %v681_v48 = vstv %s1598_s11  ;;  %v689_v49 = vstv %s1602_s12  ;;  %s1654_s25 = sld [smem:[#allocation9 + $0x2a]] }
  0x94   :  { %v652_v50 = vadd.f32 %v650_v42, %v636_v34  ;;  %v653_v51 = vadd.f32 %v651_v43, %v637_v35  ;;  %v677_v52 = vadd.f32 %v676_v41, %v674_v44  ;;  %v678_v53 = vadd.f32 %v676_v41, %v675_v45  ;;  %s1660_s26 = sld [smem:[#allocation3 + $0x2b]] }
  0x95   :  { %v666_v54 = vmul.f32 %v665_v33, %v663_v46  ;;  %v667_v55 = vmul.f32 %v665_v33, %v664_v47  ;;  %v690_v56 = vmul.f32 %v1564_v40, %v689_v49  ;;  %v691_v57 = vmul.f32 %v1567_v1, %v689_v49  ;;  %s1662_s27 = sld [smem:[#allocation7 + $0x2b]] }
  0x96   :  { %v679_v58 = vmax.f32 %v677_v52, 0.0  ;;  %v680_v59 = vmax.f32 %v678_v53, 0.0  ;;  %v692_v60 = vstv %s1608_s13  ;;  %v697_v61 = vstv %s1610_s14  ;;  %s1666_s28 = sld [smem:[#allocation9 + $0x2b]] }
  0x97   :  { %v668_v62 = vadd.f32 %v666_v54, %v652_v50  ;;  %v669_v63 = vadd.f32 %v667_v55, %v653_v51  ;;  %v693_v2 = vadd.f32 %v692_v60, %v690_v56  ;;  %v694_v3 = vadd.f32 %v692_v60, %v691_v57  ;;  %s1670_s29 = sld [smem:[#allocation3 + $0x2c]] }
  0x98   :  { %v682_v4 = vmul.f32 %v681_v48, %v679_v58  ;;  %v683_v5 = vmul.f32 %v681_v48, %v680_v59  ;;  %v705_v6 = vstv %s1616_s15  ;;  %v708_v7 = vstv %s1618_s16  ;;  %s1674_s30 = sld [smem:[#allocation7 + $0x2c]] }
  0x99   :  { %v695_v8 = vmax.f32 %v693_v2, 0.0  ;;  %v696_v9 = vmax.f32 %v694_v3, 0.0  ;;  %v706_v10 = vmul.f32 %v1564_v40, %v705_v6  ;;  %v707_v11 = vmul.f32 %v1567_v1, %v705_v6  ;;  %s1676_s1 = sld [smem:[#allocation9 + $0x2c]] }
  0x9a   :  { %v684_v12 = vadd.f32 %v682_v4, %v668_v62  ;;  %v685_v13 = vadd.f32 %v683_v5, %v669_v63  ;;  %v713_v14 = vstv %s1622_s17  ;;  %v721_v15 = vstv %s1626_s18  ;;  %s1680_s6 = sld [smem:[#allocation3 + $0x2d]] }
  0x9b   :  { %v698_v16 = vmul.f32 %v697_v61, %v695_v8  ;;  %v699_v17 = vmul.f32 %v697_v61, %v696_v9  ;;  %v709_v18 = vadd.f32 %v708_v7, %v706_v10  ;;  %v710_v19 = vadd.f32 %v708_v7, %v707_v11  ;;  %s1684_s7 = sld [smem:[#allocation7 + $0x2d]] }
  0x9c   :  { %v722_v20 = vmul.f32 %v1564_v40, %v721_v15  ;;  %v723_v21 = vmul.f32 %v1567_v1, %v721_v15  ;;  %v724_v22 = vstv %s1630_s19  ;;  %v729_v23 = vstv %s1632_s20  ;;  %s1686_s8 = sld [smem:[#allocation9 + $0x2d]]  ;;  %s1155_s20 = smov [#allocation11]  }
  0x9d   :  { %v700_v24 = vadd.f32 %v698_v16, %v684_v12  ;;  %v701_v25 = vadd.f32 %v699_v17, %v685_v13  ;;  %v711_v26 = vmax.f32 %v709_v18, 0.0  ;;  %v712_v27 = vmax.f32 %v710_v19, 0.0  ;;  %s1690_s2 = sld [smem:[#allocation3 + $0x2e]] }
  0x9e   :  { %v725_v28 = vadd.f32 %v724_v22, %v722_v20  ;;  %v726_v29 = vadd.f32 %v724_v22, %v723_v21  ;;  %v737_v30 = vstv %s1636_s21  ;;  %v740_v31 = vstv %s1640_s22  ;;  %s1696_s4 = sld [smem:[#allocation7 + $0x2e]]  ;;  %s884_s21 = sshll.u32 %s1155_s20, 4  ;;  %s885_s21 = int_to_ptr.vmem [resolvable:$true] %s884_s21 }
  0x9f   :  { %v714_v32 = vmul.f32 %v713_v14, %v711_v26  ;;  %v715_v33 = vmul.f32 %v713_v14, %v712_v27  ;;  %v738_v34 = vmul.f32 %v1564_v40, %v737_v30  ;;  %v739_v35 = vmul.f32 %v1567_v1, %v737_v30  ;;  %s1698_s10 = sld [smem:[#allocation9 + $0x2e]] }
  0xa0   :  { %v727_v36 = vmax.f32 %v725_v28, 0.0  ;;  %v728_v37 = vmax.f32 %v726_v29, 0.0  ;;  %v745_v38 = vstv %s1642_s3  ;;  %v753_v39 = vstv %s1646_s23  ;;  %s1704_s11 = sld [smem:[#allocation3 + $0x2f]]  ;;  %s886_s23 = sshll.u32 %s1758_s5, 4  ;;  %s887_s23 = int_to_ptr.hbm [resolvable:$true] %s886_s23 }
  0xa1   :  { %v716_v0 = vadd.f32 %v714_v32, %v700_v24  ;;  %v717_v41 = vadd.f32 %v715_v33, %v701_v25  ;;  %v741_v42 = vadd.f32 %v740_v31, %v738_v34  ;;  %v742_v43 = vadd.f32 %v740_v31, %v739_v35  ;;  %s1706_s12 = sld [smem:[#allocation7 + $0x2f]] }
  0xa2   :  { %v730_v44 = vmul.f32 %v729_v23, %v727_v36  ;;  %v731_v45 = vmul.f32 %v729_v23, %v728_v37  ;;  %v754_v46 = vmul.f32 %v1564_v40, %v753_v39  ;;  %v755_v47 = vmul.f32 %v1567_v1, %v753_v39  ;;  %s1710_s13 = sld [smem:[#allocation9 + $0x2f]] }
  0xa3   :  { %v743_v48 = vmax.f32 %v741_v42, 0.0  ;;  %v744_v49 = vmax.f32 %v742_v43, 0.0  ;;  %v756_v50 = vstv %s1652_s24  ;;  %v761_v51 = vstv %s1654_s25  ;;  %s1714_s14 = sld [smem:[#allocation3 + $0x30]] }
  0xa4   :  { %v732_v52 = vadd.f32 %v730_v44, %v716_v0  ;;  %v733_v53 = vadd.f32 %v731_v45, %v717_v41  ;;  %v757_v54 = vadd.f32 %v756_v50, %v754_v46  ;;  %v758_v55 = vadd.f32 %v756_v50, %v755_v47  ;;  %s1718_s15 = sld [smem:[#allocation7 + $0x30]] }
  0xa5   :  { %v746_v56 = vmul.f32 %v745_v38, %v743_v48  ;;  %v747_v57 = vmul.f32 %v745_v38, %v744_v49  ;;  %v769_v58 = vstv %s1660_s26  ;;  %v772_v59 = vstv %s1662_s27  ;;  %s1720_s16 = sld [smem:[#allocation9 + $0x30]] }
  0xa6   :  { %v759_v60 = vmax.f32 %v757_v54, 0.0  ;;  %v760_v61 = vmax.f32 %v758_v55, 0.0  ;;  %v770_v62 = vmul.f32 %v1564_v40, %v769_v58  ;;  %v771_v63 = vmul.f32 %v1567_v1, %v769_v58  ;;  %s1724_s17 = sld [smem:[#allocation3 + $0x31]] }
  0xa7   :  { %v748_v2 = vadd.f32 %v746_v56, %v732_v52  ;;  %v749_v3 = vadd.f32 %v747_v57, %v733_v53  ;;  %v777_v4 = vstv %s1666_s28  ;;  %v785_v5 = vstv %s1670_s29  ;;  %s1728_s18 = sld [smem:[#allocation7 + $0x31]] }
  0xa8   :  { %v762_v6 = vmul.f32 %v761_v51, %v759_v60  ;;  %v763_v7 = vmul.f32 %v761_v51, %v760_v61  ;;  %v773_v8 = vadd.f32 %v772_v59, %v770_v62  ;;  %v774_v9 = vadd.f32 %v772_v59, %v771_v63  ;;  %s1736_s19 = sld [smem:[#allocation9 + $0x31]] }
  0xa9   :  { %v786_v10 = vmul.f32 %v1564_v40, %v785_v5  ;;  %v787_v11 = vmul.f32 %v1567_v1, %v785_v5  ;;  %v788_v12 = vstv %s1674_s30  ;;  %v793_v13 = vstv %s1676_s1 }
  0xaa   :  { %v764_v14 = vadd.f32 %v762_v6, %v748_v2  ;;  %v765_v15 = vadd.f32 %v763_v7, %v749_v3  ;;  %v775_v16 = vmax.f32 %v773_v8, 0.0  ;;  %v776_v17 = vmax.f32 %v774_v9, 0.0 }
  0xab   :  { %v789_v18 = vadd.f32 %v788_v12, %v786_v10  ;;  %v790_v19 = vadd.f32 %v788_v12, %v787_v11  ;;  %v801_v20 = vstv %s1680_s6  ;;  %v804_v21 = vstv %s1684_s7 }
  0xac   :  { %v778_v22 = vmul.f32 %v777_v4, %v775_v16  ;;  %v779_v23 = vmul.f32 %v777_v4, %v776_v17  ;;  %v802_v24 = vmul.f32 %v1564_v40, %v801_v20  ;;  %v803_v25 = vmul.f32 %v1567_v1, %v801_v20 }
  0xad   :  { %v791_v26 = vmax.f32 %v789_v18, 0.0  ;;  %v792_v27 = vmax.f32 %v790_v19, 0.0  ;;  %v809_v28 = vstv %s1686_s8  ;;  %v817_v29 = vstv %s1690_s2 }
  0xae   :  { %v780_v30 = vadd.f32 %v778_v22, %v764_v14  ;;  %v781_v31 = vadd.f32 %v779_v23, %v765_v15  ;;  %v805_v32 = vadd.f32 %v804_v21, %v802_v24  ;;  %v806_v33 = vadd.f32 %v804_v21, %v803_v25 }
  0xaf   :  { %v794_v34 = vmul.f32 %v793_v13, %v791_v26  ;;  %v795_v35 = vmul.f32 %v793_v13, %v792_v27  ;;  %v818_v36 = vmul.f32 %v1564_v40, %v817_v29  ;;  %v819_v37 = vmul.f32 %v1567_v1, %v817_v29 }
  0xb0   :  { %v807_v38 = vmax.f32 %v805_v32, 0.0  ;;  %v808_v39 = vmax.f32 %v806_v33, 0.0  ;;  %v820_v0 = vstv %s1696_s4  ;;  %v825_v41 = vstv %s1698_s10 }
  0xb1   :  { %v796_v42 = vadd.f32 %v794_v34, %v780_v30  ;;  %v797_v43 = vadd.f32 %v795_v35, %v781_v31  ;;  %v821_v44 = vadd.f32 %v820_v0, %v818_v36  ;;  %v822_v45 = vadd.f32 %v820_v0, %v819_v37 }
  0xb2   :  { %v810_v46 = vmul.f32 %v809_v28, %v807_v38  ;;  %v811_v47 = vmul.f32 %v809_v28, %v808_v39  ;;  %v833_v48 = vstv %s1704_s11  ;;  %v836_v49 = vstv %s1706_s12 }
  0xb3   :  { %v823_v50 = vmax.f32 %v821_v44, 0.0  ;;  %v824_v51 = vmax.f32 %v822_v45, 0.0  ;;  %v834_v52 = vmul.f32 %v1564_v40, %v833_v48  ;;  %v835_v53 = vmul.f32 %v1567_v1, %v833_v48 }
  0xb4   :  { %v812_v54 = vadd.f32 %v810_v46, %v796_v42  ;;  %v813_v55 = vadd.f32 %v811_v47, %v797_v43  ;;  %v841_v56 = vstv %s1710_s13  ;;  %v849_v57 = vstv %s1714_s14 }
  0xb5   :  { %v826_v58 = vmul.f32 %v825_v41, %v823_v50  ;;  %v827_v59 = vmul.f32 %v825_v41, %v824_v51  ;;  %v837_v60 = vadd.f32 %v836_v49, %v834_v52  ;;  %v838_v61 = vadd.f32 %v836_v49, %v835_v53 }
  0xb6   :  { %v850_v62 = vmul.f32 %v1564_v40, %v849_v57  ;;  %v851_v63 = vmul.f32 %v1567_v1, %v849_v57  ;;  %v852_v2 = vstv %s1718_s15  ;;  %v857_v3 = vstv %s1720_s16 }
  0xb7   :  { %v828_v4 = vadd.f32 %v826_v58, %v812_v54  ;;  %v829_v5 = vadd.f32 %v827_v59, %v813_v55  ;;  %v839_v6 = vmax.f32 %v837_v60, 0.0  ;;  %v840_v7 = vmax.f32 %v838_v61, 0.0 }
  0xb8   :  { %v853_v8 = vadd.f32 %v852_v2, %v850_v62  ;;  %v854_v9 = vadd.f32 %v852_v2, %v851_v63  ;;  %v865_v10 = vstv %s1724_s17  ;;  %v868_v11 = vstv %s1728_s18 }
  0xb9   :  { %v842_v12 = vmul.f32 %v841_v56, %v839_v6  ;;  %v843_v13 = vmul.f32 %v841_v56, %v840_v7  ;;  %v866_v14 = vmul.f32 %v1564_v40, %v865_v10  ;;  %v867_v15 = vmul.f32 %v1567_v1, %v865_v10 }
  0xba   :  { %v855_v16 = vmax.f32 %v853_v8, 0.0  ;;  %v856_v17 = vmax.f32 %v854_v9, 0.0  ;;  %v873_v24 = vstv %s1736_s19 }
  0xbb   :  { %v844_v18 = vadd.f32 %v842_v12, %v828_v4  ;;  %v845_v19 = vadd.f32 %v843_v13, %v829_v5  ;;  %v869_v20 = vadd.f32 %v868_v11, %v866_v14  ;;  %v870_v21 = vadd.f32 %v868_v11, %v867_v15 }
  0xbc   :  { %v858_v22 = vmul.f32 %v857_v3, %v855_v16  ;;  %v859_v23 = vmul.f32 %v857_v3, %v856_v17 }
  0xbd   :  { %v871_v25 = vmax.f32 %v869_v20, 0.0  ;;  %v872_v26 = vmax.f32 %v870_v21, 0.0 }
  0xbe   :  { %v860_v27 = vadd.f32 %v858_v22, %v844_v18  ;;  %v861_v28 = vadd.f32 %v859_v23, %v845_v19 }
  0xbf   :  { %v874_v29 = vmul.f32 %v873_v24, %v871_v25  ;;  %v875_v30 = vmul.f32 %v873_v24, %v872_v26 }
  0xc1   :  { %v876_v40 = vadd.f32 %v874_v29, %v860_v27  ;;  %v877_v1 = vadd.f32 %v875_v30, %v861_v28 }
  0xc3   :  { %878 = vst [vmem:[#allocation11] sm:$0xff] %v876_v40 }
  0xc4   :  { %879 = vst [vmem:[#allocation11 + $0x8] sm:$0xff] %v877_v1 }
  0xc5   :  { %892 = dma.vmem_to_hbm [thread:$0]  %s885_s21, 256, %s887_s23, [#allocation5], %s1153_s0, %s1153_s0, %s1154_s9  }
  0xc6   :  { %1147 = dma.done.wait [#allocation5], 256  }
  0xc7   :  { %1148 = vsyncadd [#allocation5], 4294967040 }
  0xc8   :  { %897 = vsyncpa [#allocation4], 1 }
  0xc9   :  { %898 = vsyncpa [#allocation5], 1 }
  0xca   :  { %899 = vsyncpa [#allocation6], 1 }
  0xcb   :  { %900 = vsyncpa [#allocation8], 1 }

</bundles_post_ra>
